<compile_context>
chip_gen: v5e
topology: v5e:2x2
jax: 0.10.0
libtpu: 0.0.40
codegen_flags: <defaults>
</compile_context>

<pallas_src>
import jax
import jax.numpy as jnp
from jax.experimental import pallas as pl
from jax.experimental.pallas import tpu as pltpu


_NEG_SLOPE = 0.01  # PyTorch nn.LeakyReLU default


def _leaky_relu(x):
    # max(x, 0.01*x) == leaky_relu(x); 2 VALU ops (mul+max) vs 3 for where().
    return jnp.maximum(x, _NEG_SLOPE * x)


def _round_up(n, m):
    return ((n + m - 1) // m) * m


def discriminator_kernel(x_ref,
                         w1_ref, b1_ref,
                         w2_ref, b2_ref,
                         w3_ref, b3_ref,
                         w4_ref, b4_ref,
                         out_ref):
    """One batch tile.

    x_ref   : (tm, in_dim) f32  -- natural layout straight from HBM
    w1..w3  : (out, in)     bf16 -- PyTorch layout, MXU-ready for W @ h
    b1..b3  : (out, 1)      f32
    w4      : (hidden, 1)   f32  -- final layer handled on VPU + sublane reduce
    b4      : (1, 1)        f32
    out_ref : (1, tm)       f32  -- lane-dense probabilities (batch on lanes)
    """
    # In-kernel cast + transpose: batch ends up on lanes for all later layers.
    xT = x_ref[...].astype(jnp.bfloat16).T                     # (in_dim, tm)

    # Layers 1..3: bf16 matmul operands, f32 accumulation; activations in f32
    # (safe on v5e, which has no bf16 VPU).
    h = jnp.dot(w1_ref[...], xT, preferred_element_type=jnp.float32)
    h = _leaky_relu(h + b1_ref[...])

    h = jnp.dot(w2_ref[...], h.astype(jnp.bfloat16),
                preferred_element_type=jnp.float32)
    h = _leaky_relu(h + b2_ref[...])

    h = jnp.dot(w3_ref[...], h.astype(jnp.bfloat16),
                preferred_element_type=jnp.float32)
    h = _leaky_relu(h + b3_ref[...])

    # Final 256 -> 1 layer: an N=1 matmul would waste a full MXU push, so do a
    # VPU multiply + cross-sublane reduction. Result is (1, tm) -> lane-dense.
    logits = jnp.sum(h * w4_ref[...], axis=0, keepdims=True) + b4_ref[...]

    # Sigmoid: exp and approx reciprocal both go to the EUP (free slot).
    out_ref[...] = pl.reciprocal(1.0 + jnp.exp(-logits),
                                 approx=True).astype(out_ref.dtype)


def discriminator_forward(x, params, *, batch_tile=2048):
    """x: (B, in_dim) f32; params in PyTorch layout [(W(out,in), b(out,)), ...].

    Returns (B, 1) f32 probabilities, matching nn.Sequential(...).forward(X).
    """
    (w1, b1), (w2, b2), (w3, b3), (w4, b4) = params
    B, in_dim = x.shape
    hidden = w1.shape[0]
    assert w4.shape == (1, hidden)

    # Batch tile: multiple of 128 (lane width / MXU N). Large by default to
    # amortize per-grid-step overhead; when B >= 256 cap it so the grid has at
    # least 2 steps and both v7x TensorCores get work (no effect on v5e/v6e).
    Bp128 = _round_up(B, 128)
    tm = min(_round_up(batch_tile, 128), Bp128)
    if B >= 256:
        tm = min(tm, _round_up(Bp128 // 2, 128))
    Bp = _round_up(B, tm)
    grid = (Bp // tm,)

    # No host-side transpose/cast pass over x; only zero-pad the ragged tail.
    x_p = x.astype(jnp.float32)
    if Bp != B:
        x_p = jnp.pad(x_p, ((0, Bp - B), (0, 0)))

    # Weight / bias prep: bf16 for the MXU layers, f32 column for the VPU layer.
    w1b = w1.astype(jnp.bfloat16)
    w2b = w2.astype(jnp.bfloat16)
    w3b = w3.astype(jnp.bfloat16)
    w4c = w4.astype(jnp.float32).T.reshape(hidden, 1)
    b1c = b1.astype(jnp.float32).reshape(hidden, 1)
    b2c = b2.astype(jnp.float32).reshape(hidden, 1)
    b3c = b3.astype(jnp.float32).reshape(hidden, 1)
    b4c = b4.astype(jnp.float32).reshape(1, 1)

    def full_spec(arr):
        # Whole array resident in VMEM, same block for every grid step.
        return pl.BlockSpec(arr.shape, lambda i: (0, 0))

    in_specs = [
        pl.BlockSpec((tm, in_dim), lambda i: (i, 0)),   # x tile over batch rows
        full_spec(w1b), full_spec(b1c),
        full_spec(w2b), full_spec(b2c),
        full_spec(w3b), full_spec(b3c),
        full_spec(w4c), full_spec(b4c),
    ]
    out_specs = pl.BlockSpec((1, tm), lambda i: (0, i))

    param_bytes = sum(int(a.size) * a.dtype.itemsize
                      for a in (w1b, b1c, w2b, b2c, w3b, b3c, w4c, b4c))
    flops = 2 * Bp * (in_dim * hidden + 2 * hidden * hidden + hidden)
    cost = pl.CostEstimate(
        flops=flops,
        transcendentals=2 * Bp,  # exp + approx reciprocal per batch element
        bytes_accessed=int(x_p.size) * 4 + param_bytes + Bp * 4,
    )

    # VMEM budget: x tile (double-buffered, f32) + resident params
    # (double-buffered) + a few f32/bf16 activation stages + out tile.
    # Cap at 48 MiB so v7x's 64 MiB VMEM always has headroom.
    vmem_need = (2 * tm * in_dim * 4
                 + 2 * param_bytes
                 + 8 * hidden * tm * 4
                 + 2 * tm * 4)
    vmem_limit = int(min(max(32 << 20, int(vmem_need * 1.25)), 48 << 20))

    out = pl.pallas_call(
        discriminator_kernel,
        out_shape=jax.ShapeDtypeStruct((1, Bp), jnp.float32),
        grid_spec=pltpu.PrefetchScalarGridSpec(
            num_scalar_prefetch=0,
            grid=grid,
            in_specs=in_specs,
            out_specs=out_specs,
        ),
        compiler_params=pltpu.CompilerParams(
            dimension_semantics=("parallel",),   # shard batch tiles across TCs
            vmem_limit_bytes=vmem_limit,
        ),
        cost_estimate=cost,
    )(x_p, w1b, b1c, w2b, b2c, w3b, b3c, w4c, b4c)

    return out[0, :B].reshape(B, 1)


def init_params(key, in_dim, hidden=256):
    """PyTorch nn.Linear default init (U[-1/sqrt(fan_in), 1/sqrt(fan_in)]).
    Weights stored in PyTorch layout (out_features, in_features)."""
    dims = [(hidden, in_dim), (hidden, hidden), (hidden, hidden), (1, hidden)]
    params = []
    for (fan_out, fan_in) in dims:
        key, kw, kb = jax.random.split(key, 3)
        bound = 1.0 / jnp.sqrt(jnp.float32(fan_in))
        w = jax.random.uniform(kw, (fan_out, fan_in), jnp.float32, -bound, bound)
        b = jax.random.uniform(kb, (fan_out,), jnp.float32, -bound, bound)
        params.append((w, b))
    return params


def reference_forward(x, params):
    (w1, b1), (w2, b2), (w3, b3), (w4, b4) = params
    h = _leaky_relu(x @ w1.T + b1)
    h = _leaky_relu(h @ w2.T + b2)
    h = _leaky_relu(h @ w3.T + b3)
    return jax.nn.sigmoid(h @ w4.T + b4)


if __name__ == "__main__":
    key = jax.random.PRNGKey(0)
    B, in_dim = 16, 32

    kx, kp = jax.random.split(key)
    x = jax.random.normal(kx, (B, in_dim), jnp.float32)
    params = init_params(kp, in_dim)

    out = discriminator_forward(x, params)
    out = jax.block_until_ready(out)

    ref = reference_forward(x, params)
    assert out.shape == (B, 1)
    # bf16 matmul operands + approx-reciprocal sigmoid vs. a pure-f32 reference.
    assert jnp.allclose(out, ref, atol=2e-2, rtol=0), "mismatch vs reference"

    print("KERNEL_OK")
</pallas_src>

<mosaic_0001>
module attributes {stable_mosaic.version = 11 : i64} {
  func.func @discriminator_kernel(%arg0: i32, %arg1: memref<128x32xf32, #tpu.memory_space<vmem>>, %arg2: memref<256x32xbf16, #tpu.memory_space<vmem>>, %arg3: memref<256x1xf32, #tpu.memory_space<vmem>>, %arg4: memref<256x256xbf16, #tpu.memory_space<vmem>>, %arg5: memref<256x1xf32, #tpu.memory_space<vmem>>, %arg6: memref<256x256xbf16, #tpu.memory_space<vmem>>, %arg7: memref<256x1xf32, #tpu.memory_space<vmem>>, %arg8: memref<256x1xf32, #tpu.memory_space<vmem>>, %arg9: memref<1x1xf32, #tpu.memory_space<vmem>>, %arg10: memref<1x128xf32, #tpu.memory_space<vmem>>) attributes {dimension_semantics = [#tpu.dimension_semantics<parallel>], iteration_bounds = array<i64: 1>, scalar_prefetch = 0 : i64, scratch_operands = 0 : i64, tpu.core_type = #tpu.core_type<tc>, window_params = [{transform_indices = @transform_0, window_bounds = array<i64: 128, 32>}, {pipeline_mode = #tpu.pipeline_mode<synchronous>, transform_indices = @transform_1, window_bounds = array<i64: 256, 32>}, {pipeline_mode = #tpu.pipeline_mode<synchronous>, transform_indices = @transform_2, window_bounds = array<i64: 256, 1>}, {pipeline_mode = #tpu.pipeline_mode<synchronous>, transform_indices = @transform_3, window_bounds = array<i64: 256, 256>}, {pipeline_mode = #tpu.pipeline_mode<synchronous>, transform_indices = @transform_4, window_bounds = array<i64: 256, 1>}, {pipeline_mode = #tpu.pipeline_mode<synchronous>, transform_indices = @transform_5, window_bounds = array<i64: 256, 256>}, {pipeline_mode = #tpu.pipeline_mode<synchronous>, transform_indices = @transform_6, window_bounds = array<i64: 256, 1>}, {pipeline_mode = #tpu.pipeline_mode<synchronous>, transform_indices = @transform_7, window_bounds = array<i64: 256, 1>}, {pipeline_mode = #tpu.pipeline_mode<synchronous>, transform_indices = @transform_8, window_bounds = array<i64: 1, 1>}, {transform_indices = @transform_9, window_bounds = array<i64: 1, 128>}]} {
    %c0 = arith.constant 0 : index
    %c0_0 = arith.constant 0 : index
    %0 = vector.load %arg1[%c0, %c0_0] : memref<128x32xf32, #tpu.memory_space<vmem>>, vector<128x32xf32>
    %1 = arith.truncf %0 : vector<128x32xf32> to vector<128x32xbf16>
    %2 = tpu.transpose %1, [1, 0] : vector<128x32xbf16> -> vector<32x128xbf16>
    %c0_1 = arith.constant 0 : index
    %c0_2 = arith.constant 0 : index
    %3 = vector.load %arg2[%c0_1, %c0_2] : memref<256x32xbf16, #tpu.memory_space<vmem>>, vector<256x32xbf16>
    %cst = arith.constant dense<0.000000e+00> : vector<256x128xf32>
    %4 = tpu.matmul %3, %2, %cst {dimension_numbers = #tpu.dot_dimension_numbers<[1], [0], [0], [1], [0, 0, 1, 1], [], []>} : vector<256x32xbf16>, vector<32x128xbf16>, vector<256x128xf32> -> vector<256x128xf32>
    %c0_3 = arith.constant 0 : index
    %c0_4 = arith.constant 0 : index
    %5 = vector.load %arg3[%c0_3, %c0_4] : memref<256x1xf32, #tpu.memory_space<vmem>>, vector<256x1xf32>
    %6 = vector.broadcast %5 : vector<256x1xf32> to vector<256x128xf32>
    %7 = arith.addf %4, %6 : vector<256x128xf32>
    %cst_5 = arith.constant 0.00999999977 : f32
    %8 = vector.broadcast %cst_5 : f32 to vector<256x128xf32>
    %9 = arith.mulf %8, %7 : vector<256x128xf32>
    %10 = arith.maximumf %7, %9 : vector<256x128xf32>
    %c0_6 = arith.constant 0 : index
    %c0_7 = arith.constant 0 : index
    %11 = vector.load %arg4[%c0_6, %c0_7] : memref<256x256xbf16, #tpu.memory_space<vmem>>, vector<256x256xbf16>
    %12 = arith.truncf %10 : vector<256x128xf32> to vector<256x128xbf16>
    %cst_8 = arith.constant dense<0.000000e+00> : vector<256x128xf32>
    %13 = tpu.matmul %11, %12, %cst_8 {dimension_numbers = #tpu.dot_dimension_numbers<[1], [0], [0], [1], [0, 0, 1, 1], [], []>} : vector<256x256xbf16>, vector<256x128xbf16>, vector<256x128xf32> -> vector<256x128xf32>
    %c0_9 = arith.constant 0 : index
    %c0_10 = arith.constant 0 : index
    %14 = vector.load %arg5[%c0_9, %c0_10] : memref<256x1xf32, #tpu.memory_space<vmem>>, vector<256x1xf32>
    %15 = vector.broadcast %14 : vector<256x1xf32> to vector<256x128xf32>
    %16 = arith.addf %13, %15 : vector<256x128xf32>
    %cst_11 = arith.constant 0.00999999977 : f32
    %17 = vector.broadcast %cst_11 : f32 to vector<256x128xf32>
    %18 = arith.mulf %17, %16 : vector<256x128xf32>
    %19 = arith.maximumf %16, %18 : vector<256x128xf32>
    %c0_12 = arith.constant 0 : index
    %c0_13 = arith.constant 0 : index
    %20 = vector.load %arg6[%c0_12, %c0_13] : memref<256x256xbf16, #tpu.memory_space<vmem>>, vector<256x256xbf16>
    %21 = arith.truncf %19 : vector<256x128xf32> to vector<256x128xbf16>
    %cst_14 = arith.constant dense<0.000000e+00> : vector<256x128xf32>
    %22 = tpu.matmul %20, %21, %cst_14 {dimension_numbers = #tpu.dot_dimension_numbers<[1], [0], [0], [1], [0, 0, 1, 1], [], []>} : vector<256x256xbf16>, vector<256x128xbf16>, vector<256x128xf32> -> vector<256x128xf32>
    %c0_15 = arith.constant 0 : index
    %c0_16 = arith.constant 0 : index
    %23 = vector.load %arg7[%c0_15, %c0_16] : memref<256x1xf32, #tpu.memory_space<vmem>>, vector<256x1xf32>
    %24 = vector.broadcast %23 : vector<256x1xf32> to vector<256x128xf32>
    %25 = arith.addf %22, %24 : vector<256x128xf32>
    %cst_17 = arith.constant 0.00999999977 : f32
    %26 = vector.broadcast %cst_17 : f32 to vector<256x128xf32>
    %27 = arith.mulf %26, %25 : vector<256x128xf32>
    %28 = arith.maximumf %25, %27 : vector<256x128xf32>
    %c0_18 = arith.constant 0 : index
    %c0_19 = arith.constant 0 : index
    %29 = vector.load %arg8[%c0_18, %c0_19] : memref<256x1xf32, #tpu.memory_space<vmem>>, vector<256x1xf32>
    %30 = vector.broadcast %29 : vector<256x1xf32> to vector<256x128xf32>
    %31 = arith.mulf %28, %30 : vector<256x128xf32>
    %cst_20 = arith.constant dense<0.000000e+00> : vector<128xf32>
    %32 = vector.multi_reduction <add>, %31, %cst_20 [0] : vector<256x128xf32> to vector<128xf32>
    %33 = vector.shape_cast %32 : vector<128xf32> to vector<1x128xf32>
    %c0_21 = arith.constant 0 : index
    %c0_22 = arith.constant 0 : index
    %34 = vector.load %arg9[%c0_21, %c0_22] : memref<1x1xf32, #tpu.memory_space<vmem>>, vector<1x1xf32>
    %35 = vector.broadcast %34 : vector<1x1xf32> to vector<1x128xf32>
    %36 = arith.addf %33, %35 : vector<1x128xf32>
    %cst_23 = arith.constant 0.000000e+00 : f32
    %37 = vector.broadcast %cst_23 : f32 to vector<1x128xf32>
    %38 = arith.subf %37, %36 : vector<1x128xf32>
    %39 = math.exp %38 : vector<1x128xf32>
    %cst_24 = arith.constant 1.000000e+00 : f32
    %40 = vector.broadcast %cst_24 : f32 to vector<1x128xf32>
    %41 = arith.addf %40, %39 : vector<1x128xf32>
    %42 = tpu.reciprocal %41 {approx = true} : vector<1x128xf32> -> vector<1x128xf32>
    %c0_25 = arith.constant 0 : index
    %c0_26 = arith.constant 0 : index
    %43 = vector.load %arg10[%c0_25, %c0_26] : memref<1x128xf32, #tpu.memory_space<vmem>>, vector<1x128xf32>
    tpu.vector_store %arg10[%c0_25, %c0_26], %42 {strides = array<i32>} : memref<1x128xf32, #tpu.memory_space<vmem>>, vector<1x128xf32>,
    return
  }
  func.func @transform_0(%arg0: i32) -> (i32, i32) {
    %c0_i32 = arith.constant 0 : i32
    %c0_i32_0 = arith.constant 0 : i32
    return %arg0, %c0_i32 : i32, i32
  }
  func.func @transform_1(%arg0: i32) -> (i32, i32) {
    %c0_i32 = arith.constant 0 : i32
    %c0_i32_0 = arith.constant 0 : i32
    %c0_i32_1 = arith.constant 0 : i32
    return %c0_i32, %c0_i32_0 : i32, i32
  }
  func.func @transform_2(%arg0: i32) -> (i32, i32) {
    %c0_i32 = arith.constant 0 : i32
    %c0_i32_0 = arith.constant 0 : i32
    %c0_i32_1 = arith.constant 0 : i32
    return %c0_i32, %c0_i32_0 : i32, i32
  }
  func.func @transform_3(%arg0: i32) -> (i32, i32) {
    %c0_i32 = arith.constant 0 : i32
    %c0_i32_0 = arith.constant 0 : i32
    %c0_i32_1 = arith.constant 0 : i32
    return %c0_i32, %c0_i32_0 : i32, i32
  }
  func.func @transform_4(%arg0: i32) -> (i32, i32) {
    %c0_i32 = arith.constant 0 : i32
    %c0_i32_0 = arith.constant 0 : i32
    %c0_i32_1 = arith.constant 0 : i32
    return %c0_i32, %c0_i32_0 : i32, i32
  }
  func.func @transform_5(%arg0: i32) -> (i32, i32) {
    %c0_i32 = arith.constant 0 : i32
    %c0_i32_0 = arith.constant 0 : i32
    %c0_i32_1 = arith.constant 0 : i32
    return %c0_i32, %c0_i32_0 : i32, i32
  }
  func.func @transform_6(%arg0: i32) -> (i32, i32) {
    %c0_i32 = arith.constant 0 : i32
    %c0_i32_0 = arith.constant 0 : i32
    %c0_i32_1 = arith.constant 0 : i32
    return %c0_i32, %c0_i32_0 : i32, i32
  }
  func.func @transform_7(%arg0: i32) -> (i32, i32) {
    %c0_i32 = arith.constant 0 : i32
    %c0_i32_0 = arith.constant 0 : i32
    %c0_i32_1 = arith.constant 0 : i32
    return %c0_i32, %c0_i32_0 : i32, i32
  }
  func.func @transform_8(%arg0: i32) -> (i32, i32) {
    %c0_i32 = arith.constant 0 : i32
    %c0_i32_0 = arith.constant 0 : i32
    %c0_i32_1 = arith.constant 0 : i32
    return %c0_i32, %c0_i32_0 : i32, i32
  }
  func.func @transform_9(%arg0: i32) -> (i32, i32) {
    %c0_i32 = arith.constant 0 : i32
    %c0_i32_0 = arith.constant 0 : i32
    return %c0_i32, %arg0 : i32, i32
  }
}

</mosaic_0001>

<bundles_post_ra>
// kernel: tpu_custom_call.1
= control target key start
LH: loop header
LB: loop body
LE: loop exit
PB: predicated region body
PF: predicated region fallthrough
CT: control target
= control target key end

     0   :  { %s3919_s0 = inlined_call_operand.vmem [shape: f32[128,32], index: 0, kind: input, shape index: {}]   ;;  %s3920_s1 = inlined_call_operand.vmem [shape: bf16[256,32], index: 1, kind: input, shape index: {}]   ;;  %s3921_s2 = inlined_call_operand.vmem [shape: f32[256,1], index: 2, kind: input, shape index: {}]   ;;  %s3922_s3 = inlined_call_operand.vmem [shape: bf16[256,256], index: 3, kind: input, shape index: {}]   ;;  %s3923_s4 = inlined_call_operand.vmem [shape: f32[256,1], index: 4, kind: input, shape index: {}]   ;;  %s3924_s5 = inlined_call_operand.vmem [shape: bf16[256,256], index: 5, kind: input, shape index: {}]   ;;  %s3925_s6 = inlined_call_operand.vmem [shape: f32[256,1], index: 6, kind: input, shape index: {}]   ;;  %s3926_s7 = inlined_call_operand.vmem [shape: f32[256,1], index: 7, kind: input, shape index: {}]   ;;  %s3927_s8 = inlined_call_operand.<no memory space> [shape: f32[1,1], index: 8, kind: input, shape index: {}]   ;;  %s3928_s9 = inlined_call_operand.hbm [shape: f32[1,128], index: 9, kind: output, shape index: {}]  }
   0x1   :  { %v14_v0 = vstv %s3927_s8 }
   0x2   :  { %15 = vst [vmem:[#allocation2] sm:$0x1] %v14_v0 }
   0x3   :  { %v105_v1 = vld [vmem:[%s3921_s2 + $0x70] sm:$0xff]  ;;  %v103_v2 = vld [vmem:[%s3921_s2 + $0x60] sm:$0xff]  ;;  %v2639_v4 = vmov 0   ;;  %v50_v6 = vld [vmem:[%s3919_s0 + $0x78] sm:$0xff]  ;;  %vm363_vm0 = vcmask 261120  }
   0x4   :  { %v101_v3 = vld [vmem:[%s3921_s2 + $0x50] sm:$0xff]  ;;  %2608 = vset.pattern.permute.xlu2 %v2639_v4  ;;  %2607 = vset.pattern.permute.xlu1 %v2639_v4  ;;  %v47_v8 = vld [vmem:[%s3919_s0 + $0x60] sm:$0xff]  ;;  %v48_v9 = vld [vmem:[%s3919_s0 + $0x68] sm:$0xff] }
   0x5   :  { %v49_v5 = vld [vmem:[%s3919_s0 + $0x70] sm:$0xff]  ;;  %2606 = vset.pattern.permute.xlu0 %v2639_v4  ;;  %185 = vperm.xlu1 %2607, %v103_v2   ;;  %v57_v11 = vpack.c.bf16 %v48_v9, %v47_v8  ;;  %v104_v12 = vld [vmem:[%s3921_s2 + $0x68] sm:$0xff]  ;;  %v106_v13 = vld [vmem:[%s3921_s2 + $0x78] sm:$0xff] }
   0x6   :  { %v58_v7 = vpack.c.bf16 %v50_v6, %v49_v5  ;;  %195 = vperm.xlu0 %2606, %v105_v1   ;;  %175 = vperm.xlu2 %2608, %v101_v3   ;;  %v102_v14 = vld [vmem:[%s3921_s2 + $0x58] sm:$0xff] }
   0x8   :  { %v434_v10 = vsel %vm363_vm0, %v58_v7, 0 }
   0x9   :  { %436 = vmatpush.bf16.xpose.msra.mxu0 %v434_v10 }
   0xa   :  { %16 = vsyncpa [#allocation4], 0  ;;  %v431_v15 = vsel %vm363_vm0, %v57_v11, 0  ;;  %v45_v16 = vld [vmem:[%s3919_s0 + $0x50] sm:$0xff]  ;;  %v46_v17 = vld [vmem:[%s3919_s0 + $0x58] sm:$0xff]  ;;  %s2155_s17 = sshll.u32 %s3928_s9, 4  ;;  %s2156_s17 = int_to_ptr.hbm [resolvable:$true] %s2155_s17 }
   0xb   :  { %v56_v18 = vpack.c.bf16 %v46_v17, %v45_v16  ;;  %v100_v19 = vld [vmem:[%s3921_s2 + $0x48] sm:$0xff]  ;;  %v99_v20 = vld [vmem:[%s3921_s2 + $0x40] sm:$0xff]  ;;  %v97_v21 = vld [vmem:[%s3921_s2 + $0x30] sm:$0xff] }
   0xc   :  { %v43_v23 = vld [vmem:[%s3919_s0 + $0x40] sm:$0xff]  ;;  %v44_v24 = vld [vmem:[%s3919_s0 + $0x48] sm:$0xff]  ;;  %v98_v27 = vld [vmem:[%s3921_s2 + $0x38] sm:$0xff] }
   0xd   :  { %190 = vperm.xlu1 %2607, %v104_v12   ;;  %v428_v22 = vsel %vm363_vm0, %v56_v18, 0  ;;  %v55_v25 = vpack.c.bf16 %v44_v24, %v43_v23  ;;  %v95_v26 = vld [vmem:[%s3921_s2 + $0x20] sm:$0xff]  ;;  %v96_v28 = vld [vmem:[%s3921_s2 + $0x28] sm:$0xff]  ;;  %v41_v30 = vld [vmem:[%s3919_s0 + $0x30] sm:$0xff] }
   0xe   :  { %200 = vperm.xlu0 %2606, %v106_v13   ;;  %180 = vperm.xlu2 %2608, %v102_v14   ;;  %v42_v31 = vld [vmem:[%s3919_s0 + $0x38] sm:$0xff]  ;;  %v93_v34 = vld [vmem:[%s3921_s2 + $0x10] sm:$0xff]  ;;  %v91_v35 = vld [vmem:[%s3921_s2] sm:$0xff] }
   0xf   :  { %v425_v29 = vsel %vm363_vm0, %v55_v25, 0  ;;  %v54_v32 = vpack.c.bf16 %v42_v31, %v41_v30  ;;  %v94_v33 = vld [vmem:[%s3921_s2 + $0x18] sm:$0xff]  ;;  %v39_v37 = vld [vmem:[%s3919_s0 + $0x20] sm:$0xff]  ;;  %v40_v38 = vld [vmem:[%s3919_s0 + $0x28] sm:$0xff] }
  0x10   :  { %v53_v39 = vpack.c.bf16 %v40_v38, %v39_v37  ;;  %v121_v40 = vld [vmem:[%s3921_s2 + $0xf0] sm:$0xff]  ;;  %v92_v41 = vld [vmem:[%s3921_s2 + $0x8] sm:$0xff]  ;;  %v122_v42 = vld [vmem:[%s3921_s2 + $0xf8] sm:$0xff] }
  0x11   :  { %437 = vmatpush.bf16.xpose.msra.mxu0 %v431_v15  ;;  %v422_v36 = vsel %vm363_vm0, %v54_v32, 0  ;;  %v37_v44 = vld [vmem:[%s3919_s0 + $0x10] sm:$0xff]  ;;  %v38_v45 = vld [vmem:[%s3919_s0 + $0x18] sm:$0xff]  ;;  %v120_v47 = vld [vmem:[%s3921_s2 + $0xe8] sm:$0xff] }
  0x12   :  { %v419_v43 = vsel %vm363_vm0, %v53_v39, 0  ;;  %v52_v46 = vpack.c.bf16 %v38_v45, %v37_v44  ;;  %v119_v48 = vld [vmem:[%s3921_s2 + $0xe0] sm:$0xff]  ;;  %v117_v49 = vld [vmem:[%s3921_s2 + $0xd0] sm:$0xff]  ;;  %v36_v52 = vld [vmem:[%s3919_s0 + $0x8] sm:$0xff] }
  0x13   :  { %v35_v51 = vld [vmem:[%s3919_s0] sm:$0xff]  ;;  %v118_v55 = vld [vmem:[%s3921_s2 + $0xd8] sm:$0xff]  ;;  %v116_v56 = vld [vmem:[%s3921_s2 + $0xc8] sm:$0xff] }
  0x14   :  { %v416_v50 = vsel %vm363_vm0, %v52_v46, 0  ;;  %v51_v53 = vpack.c.bf16 %v36_v52, %v35_v51  ;;  %v115_v54 = vld [vmem:[%s3921_s2 + $0xc0] sm:$0xff]  ;;  %v114_v58 = vld [vmem:[%s3921_s2 + $0xb8] sm:$0xff]  ;;  %v113_v59 = vld [vmem:[%s3921_s2 + $0xb0] sm:$0xff] }
  0x15   :  { %170 = vperm.xlu1 %2607, %v100_v19   ;;  %v111_v60 = vld [vmem:[%s3921_s2 + $0xa0] sm:$0xff]  ;;  %v109_v62 = vld [vmem:[%s3921_s2 + $0x90] sm:$0xff]  ;;  %v112_v63 = vld [vmem:[%s3921_s2 + $0xa8] sm:$0xff] }
  0x16   :  { %165 = vperm.xlu0 %2606, %v99_v20   ;;  %155 = vperm.xlu2 %2608, %v97_v21   ;;  %v413_v57 = vsel %vm363_vm0, %v51_v53, 0  ;;  %v2500_v61 = vld [vmem:[%s3920_s1] sm:$0xff]  ;;  %v110_v0 = vld [vmem:[%s3921_s2 + $0x98] sm:$0xff]  ;;  %v108_v1 = vld [vmem:[%s3921_s2 + $0x88] sm:$0xff] }
  0x17   :  { %v107_v2 = vld [vmem:[%s3921_s2 + $0x80] sm:$0xff]  ;;  %v2501_v4 = vld [vmem:[%s3920_s1 + $0x8] sm:$0xff]  ;;  %v639_v5 = vld [vmem:[%s3923_s4 + $0x10] sm:$0xff] }
  0x18   :  { %v637_v3 = vld [vmem:[%s3923_s4] sm:$0xff]  ;;  %v638_v6 = vld [vmem:[%s3923_s4 + $0x8] sm:$0xff]  ;;  %v640_v7 = vld [vmem:[%s3923_s4 + $0x18] sm:$0xff] }
  0x19   :  { %438 = vmatpush.bf16.xpose.msra.mxu0 %v428_v22  ;;  %v642_v8 = vld [vmem:[%s3923_s4 + $0x28] sm:$0xff]  ;;  %v641_v9 = vld [vmem:[%s3923_s4 + $0x20] sm:$0xff]  ;;  %v643_v10 = vld [vmem:[%s3923_s4 + $0x30] sm:$0xff] }
  0x1a   :  { %v2502_v11 = vld [vmem:[%s3920_s1 + $0x10] sm:$0xff]  ;;  %v645_v12 = vld [vmem:[%s3923_s4 + $0x40] sm:$0xff]  ;;  %v644_v13 = vld [vmem:[%s3923_s4 + $0x38] sm:$0xff] }
  0x1b   :  { %v646_v14 = vld [vmem:[%s3923_s4 + $0x48] sm:$0xff]  ;;  %v648_v15 = vld [vmem:[%s3923_s4 + $0x58] sm:$0xff]  ;;  %v647_v16 = vld [vmem:[%s3923_s4 + $0x50] sm:$0xff] }
  0x1c   :  { %v649_v17 = vld [vmem:[%s3923_s4 + $0x60] sm:$0xff]  ;;  %v2503_v18 = vld [vmem:[%s3920_s1 + $0x18] sm:$0xff]  ;;  %v651_v20 = vld [vmem:[%s3923_s4 + $0x70] sm:$0xff] }
  0x1d   :  { %145 = vperm.xlu1 %2607, %v95_v26   ;;  %v652_v19 = vld [vmem:[%s3923_s4 + $0x78] sm:$0xff]  ;;  %v650_v21 = vld [vmem:[%s3923_s4 + $0x68] sm:$0xff]  ;;  %v667_v23 = vld [vmem:[%s3923_s4 + $0xf0] sm:$0xff] }
  0x1e   :  { %160 = vperm.xlu0 %2606, %v98_v27   ;;  %150 = vperm.xlu2 %2608, %v96_v28   ;;  %v668_v22 = vld [vmem:[%s3923_s4 + $0xf8] sm:$0xff]  ;;  %v665_v24 = vld [vmem:[%s3923_s4 + $0xe0] sm:$0xff]  ;;  %v663_v26 = vld [vmem:[%s3923_s4 + $0xd0] sm:$0xff] }
  0x1f   :  { %v2504_v25 = vld [vmem:[%s3920_s1 + $0x20] sm:$0xff]  ;;  %v666_v27 = vld [vmem:[%s3923_s4 + $0xe8] sm:$0xff]  ;;  %v664_v28 = vld [vmem:[%s3923_s4 + $0xd8] sm:$0xff] }
  0x20   :  { %v661_v30 = vld [vmem:[%s3923_s4 + $0xc0] sm:$0xff]  ;;  %v659_v31 = vld [vmem:[%s3923_s4 + $0xb0] sm:$0xff]  ;;  %v2505_v32 = vld [vmem:[%s3920_s1 + $0x28] sm:$0xff] }
  0x21   :  { %439 = vmatpush.bf16.xpose.msra.mxu0 %v425_v29  ;;  %v662_v29 = vld [vmem:[%s3923_s4 + $0xc8] sm:$0xff]  ;;  %v656_v38 = vld [vmem:[%s3923_s4 + $0x98] sm:$0xff]  ;;  %v655_v39 = vld [vmem:[%s3923_s4 + $0x90] sm:$0xff] }
  0x22   :  { %v1279_v44 = vld [vmem:[%s3925_s6] sm:$0xff]  ;;  %v654_v45 = vld [vmem:[%s3923_s4 + $0x88] sm:$0xff]  ;;  %v2507_v51 = vld [vmem:[%s3920_s1 + $0x38] sm:$0xff] }
  0x23   :  { %v1280_v46 = vld [vmem:[%s3925_s6 + $0x8] sm:$0xff] }
  0x25   :  { %140 = vperm.xlu1 %2607, %v94_v33  }
  0x26   :  { %135 = vperm.xlu0 %2606, %v93_v34   ;;  %125 = vperm.xlu2 %2608, %v91_v35   ;;  %v657_v34 = vld [vmem:[%s3923_s4 + $0xa0] sm:$0xff]  ;;  %v660_v35 = vld [vmem:[%s3923_s4 + $0xb8] sm:$0xff] }
  0x29   :  { %440 = vmatpush.bf16.xpose.msra.mxu0 %v422_v36  ;;  %v658_v36 = vld [vmem:[%s3923_s4 + $0xa8] sm:$0xff] }
  0x2d   :  { %275 = vperm.xlu1 %2607, %v121_v40   ;;  %v653_v40 = vld [vmem:[%s3923_s4 + $0x80] sm:$0xff] }
  0x2e   :  { %130 = vperm.xlu0 %2606, %v92_v41   ;;  %280 = vperm.xlu2 %2608, %v122_v42   ;;  %v2506_v41 = vld [vmem:[%s3920_s1 + $0x30] sm:$0xff] }
  0x31   :  { %441 = vmatpush.bf16.xpose.msra.mxu0 %v419_v43 }
  0x35   :  { %270 = vperm.xlu1 %2607, %v120_v47  }
  0x36   :  { %265 = vperm.xlu0 %2606, %v119_v48   ;;  %255 = vperm.xlu2 %2608, %v117_v49   ;;  %v1282_v48 = vld [vmem:[%s3925_s6 + $0x18] sm:$0xff]  ;;  %v1281_v49 = vld [vmem:[%s3925_s6 + $0x10] sm:$0xff] }
  0x39   :  { %442 = vmatpush.bf16.xpose.msra.mxu0 %v416_v50  ;;  %v1283_v50 = vld [vmem:[%s3925_s6 + $0x20] sm:$0xff] }
  0x3d   :  { %245 = vperm.xlu1 %2607, %v115_v54  }
  0x3e   :  { %260 = vperm.xlu0 %2606, %v118_v55   ;;  %250 = vperm.xlu2 %2608, %v116_v56   ;;  %v1285_v55 = vld [vmem:[%s3925_s6 + $0x30] sm:$0xff]  ;;  %v1284_v56 = vld [vmem:[%s3925_s6 + $0x28] sm:$0xff] }
  0x41   :  { %443 = vmatpush.bf16.xpose.msra.mxu0 %v413_v57  ;;  %v1286_v57 = vld [vmem:[%s3925_s6 + $0x38] sm:$0xff] }
  0x45   :  { %240 = vperm.xlu1 %2607, %v114_v58  }
  0x46   :  { %235 = vperm.xlu0 %2606, %v113_v59   ;;  %225 = vperm.xlu2 %2608, %v111_v60  }
  0x48   :  { %2228 = vmatmul.msk.bf16.vlgmr.msra.gmra.mxu0 %vm363_vm0, %v2500_v61  ;;  %v1288_v61 = vld [vmem:[%s3925_s6 + $0x48] sm:$0xff] }
  0x4d   :  { %215 = vperm.xlu1 %2607, %v109_v62   ;;  %v1287_v62 = vld [vmem:[%s3925_s6 + $0x40] sm:$0xff] }
  0x4e   :  { %230 = vperm.xlu0 %2606, %v112_v63   ;;  %220 = vperm.xlu2 %2608, %v110_v0   ;;  %v1289_v63 = vld [vmem:[%s3925_s6 + $0x50] sm:$0xff]  ;;  %v2508_v0 = vld [vmem:[%s3920_s1 + $0x40] sm:$0xff] }
  0x55   :  { %210 = vperm.xlu1 %2607, %v108_v1  }
  0x56   :  { %205 = vperm.xlu0 %2606, %v107_v2   ;;  %671 = vperm.xlu2 %2608, %v637_v3  }
  0x58   :  { %2229 = vmatmul.msk.bf16.gmra.mxu0 %vm363_vm0, %v2501_v4 }
  0x5d   :  { %681 = vperm.xlu1 %2607, %v639_v5   ;;  %v1291_v5 = vld [vmem:[%s3925_s6 + $0x60] sm:$0xff] }
  0x5e   :  { %676 = vperm.xlu0 %2606, %v638_v6   ;;  %686 = vperm.xlu2 %2608, %v640_v7   ;;  %v1290_v6 = vld [vmem:[%s3925_s6 + $0x58] sm:$0xff]  ;;  %v1292_v7 = vld [vmem:[%s3925_s6 + $0x68] sm:$0xff] }
  0x60   :  { %v2956_v37 = vpop.permute.xlu2 %175 }
  0x65   :  { %696 = vperm.xlu1 %2607, %v642_v8  }
  0x66   :  { %691 = vperm.xlu0 %2606, %v641_v9   ;;  %701 = vperm.xlu2 %2608, %v643_v10  }
  0x68   :  { %2230 = vmatmul.msk.bf16.gmra.mxu0 %vm363_vm0, %v2502_v11  ;;  %v2973_v43 = vpop.permute.xlu2 %180 }
  0x6d   :  { %711 = vperm.xlu1 %2607, %v645_v12  }
  0x6e   :  { %706 = vperm.xlu0 %2606, %v644_v13   ;;  %716 = vperm.xlu2 %2608, %v646_v14  }
  0x70   :  { %v2998_v52 = vpop.permute.xlu2 %155 }
  0x75   :  { %726 = vperm.xlu1 %2607, %v648_v15  }
  0x76   :  { %721 = vperm.xlu0 %2606, %v647_v16   ;;  %731 = vperm.xlu2 %2608, %v649_v17   ;;  %v1294_v16 = vld [vmem:[%s3925_s6 + $0x78] sm:$0xff] }
  0x77   :  { %v3000_v53 = vpop.permute.xlu1 %185 }
  0x78   :  { %2231 = vmatmul.msk.bf16.gmra.mxu0 %vm363_vm0, %v2503_v18  ;;  %v2945_v33 = vpop.permute.xlu0 %195  ;;  %v3014_v58 = vpop.permute.xlu2 %150  ;;  %v1293_v18 = vld [vmem:[%s3925_s6 + $0x70] sm:$0xff] }
  0x7d   :  { %746 = vperm.xlu1 %2607, %v652_v19   ;;  %v1295_v19 = vld [vmem:[%s3925_s6 + $0x80] sm:$0xff] }
  0x7e   :  { %741 = vperm.xlu0 %2606, %v651_v20   ;;  %736 = vperm.xlu2 %2608, %v650_v21   ;;  %v2509_v20 = vld [vmem:[%s3920_s1 + $0x48] sm:$0xff] }
  0x7f   :  { %v3016_v59 = vpop.permute.xlu1 %190 }
  0x80   :  { %v2970_v42 = vpop.permute.xlu0 %200  ;;  %v126_v2 = vpop.permute.xlu2 %125 }
  0x85   :  { %826 = vperm.xlu1 %2607, %v668_v22  }
  0x86   :  { %821 = vperm.xlu0 %2606, %v667_v23   ;;  %811 = vperm.xlu2 %2608, %v665_v24   ;;  %v1297_v23 = vld [vmem:[%s3925_s6 + $0x90] sm:$0xff]  ;;  %v1296_v24 = vld [vmem:[%s3925_s6 + $0x88] sm:$0xff] }
  0x87   :  { %v3031_v3 = vpop.permute.xlu1 %170 }
  0x88   :  { %2232 = vmatmul.msk.bf16.gmra.mxu0 %vm363_vm0, %v2504_v25  ;;  %v2984_v47 = vpop.permute.xlu0 %165  ;;  %v1298_v25 = vld [vmem:[%s3925_s6 + $0x98] sm:$0xff] }
  0x8d   :  { %801 = vperm.xlu1 %2607, %v663_v26  }
  0x8e   :  { %816 = vperm.xlu0 %2606, %v666_v27   ;;  %806 = vperm.xlu2 %2608, %v664_v28  }
  0x8f   :  { %v146_v15 = vpop.permute.xlu1 %145 }
  0x90   :  { %v3003_v54 = vpop.permute.xlu0 %160 }
  0x95   :  { %796 = vperm.xlu1 %2607, %v662_v29  }
  0x96   :  { %791 = vperm.xlu0 %2606, %v661_v30   ;;  %781 = vperm.xlu2 %2608, %v659_v31  }
  0x97   :  { %v141_v26 = vpop.permute.xlu1 %140 }
  0x98   :  { %2233 = vmatmul.msk.bf16.gmra.mxu0 %vm363_vm0, %v2505_v32  ;;  %v136_v60 = vpop.permute.xlu0 %135 }
  0x9d   :  { %771 = vperm.xlu1 %2607, %v657_v34   ;;  %v1300_v34 = vld [vmem:[%s3925_s6 + $0xa8] sm:$0xff] }
  0x9e   :  { %786 = vperm.xlu0 %2606, %v660_v35   ;;  %776 = vperm.xlu2 %2608, %v658_v36   ;;  %v1299_v36 = vld [vmem:[%s3925_s6 + $0xa0] sm:$0xff] }
  0xa0   :  { %v131_v8 = vpop.permute.xlu0 %130 }
  0xa5   :  { %766 = vperm.xlu1 %2607, %v656_v38   ;;  %v1301_v38 = vld [vmem:[%s3925_s6 + $0xb0] sm:$0xff] }
  0xa6   :  { %761 = vperm.xlu0 %2606, %v655_v39   ;;  %751 = vperm.xlu2 %2608, %v653_v40   ;;  %v2510_v39 = vld [vmem:[%s3920_s1 + $0x50] sm:$0xff] }
  0xa8   :  { %2234 = vmatmul.msk.bf16.gmra.mxu0 %vm363_vm0, %v2506_v41 }
  0xad   :  { %1313 = vperm.xlu1 %2607, %v1279_v44   ;;  %v1303_v44 = vld [vmem:[%s3925_s6 + $0xc0] sm:$0xff] }
  0xae   :  { %756 = vperm.xlu0 %2606, %v654_v45   ;;  %1318 = vperm.xlu2 %2608, %v1280_v46   ;;  %v1302_v45 = vld [vmem:[%s3925_s6 + $0xb8] sm:$0xff]  ;;  %v1304_v46 = vld [vmem:[%s3925_s6 + $0xc8] sm:$0xff] }
  0xb5   :  { %1328 = vperm.xlu1 %2607, %v1282_v48  }
  0xb6   :  { %1323 = vperm.xlu0 %2606, %v1281_v49   ;;  %1333 = vperm.xlu2 %2608, %v1283_v50  }
  0xb8   :  { %2235 = vmatmul.msk.bf16.gmra.mxu0 %vm363_vm0, %v2507_v51 }
  0xbd   :  { %1343 = vperm.xlu1 %2607, %v1285_v55  }
  0xbe   :  { %1338 = vperm.xlu0 %2606, %v1284_v56   ;;  %1348 = vperm.xlu2 %2608, %v1286_v57   ;;  %v1306_v57 = vld [vmem:[%s3925_s6 + $0xd8] sm:$0xff] }
  0xc5   :  { %v445_v1 = vpop.f32.mrf.mxu0  ;;  %1358 = vperm.xlu1 %2607, %v1288_v61   ;;  %v1305_v61 = vld [vmem:[%s3925_s6 + $0xd0] sm:$0xff] }
  0xc6   :  { %1353 = vperm.xlu0 %2606, %v1287_v62   ;;  %1363 = vperm.xlu2 %2608, %v1289_v63   ;;  %v446_v4 = vadd.f32 %v445_v1, %v126_v2  ;;  %v2511_v62 = vld [vmem:[%s3920_s1 + $0x58] sm:$0xff]  ;;  %v1309_v1 = vld [vmem:[%s3925_s6 + $0xf0] sm:$0xff]  ;;  %v1308_v2 = vld [vmem:[%s3925_s6 + $0xe8] sm:$0xff] }
  0xc8   :  { %2236 = vmatmul.msk.bf16.gmra.mxu0 %vm363_vm0, %v2508_v0  ;;  %v525_v10 = vmul.f32 0.01, %v446_v4 }
  0xca   :  { %v557_v13 = vmax.f32 %v446_v4, %v525_v10  ;;  %v1310_v4 = vld [vmem:[%s3925_s6 + $0xf8] sm:$0xff]  ;;  %v1874_v10 = vld [vmem:[%s3926_s7 + $0x8] sm:$0xff] }
  0xcd   :  { %v447_v9 = vpop.f32.mrf.mxu0  ;;  %1373 = vperm.xlu1 %2607, %v1291_v5  }
  0xce   :  { %v448_v11 = vadd.f32 %v447_v9, %v131_v8  ;;  %1368 = vperm.xlu0 %2606, %v1290_v6   ;;  %1378 = vperm.xlu2 %2608, %v1292_v7  }
  0xd0   :  { %v526_v12 = vmul.f32 0.01, %v448_v11 }
  0xd2   :  { %v558_v14 = vmax.f32 %v448_v11, %v526_v12  ;;  %v1873_v12 = vld [vmem:[%s3926_s7] sm:$0xff] }
  0xd4   :  { %v3045_v17 = vpack.c.bf16 %v558_v14, %v557_v13  ;;  %v2512_v13 = vld [vmem:[%s3920_s1 + $0x60] sm:$0xff] }
  0xd5   :  { %v450_v21 = vpop.f32.mrf.mxu0  ;;  %1388 = vperm.xlu1 %2607, %v1294_v16   ;;  %v1876_v16 = vld [vmem:[%s3926_s7 + $0x18] sm:$0xff] }
  0xd6   :  { %1383 = vperm.xlu0 %2606, %v1293_v18   ;;  %1393 = vperm.xlu2 %2608, %v1295_v19   ;;  %v451_v22 = vadd.f32 %v450_v21, %v136_v60  ;;  %v1878_v18 = vld [vmem:[%s3926_s7 + $0x28] sm:$0xff]  ;;  %v1879_v21 = vld [vmem:[%s3926_s7 + $0x30] sm:$0xff] }
  0xd8   :  { %2237 = vmatmul.msk.bf16.gmra.mxu0 %vm363_vm0, %v2509_v20  ;;  %v527_v28 = vmul.f32 0.01, %v451_v22  ;;  %v1880_v20 = vld [vmem:[%s3926_s7 + $0x38] sm:$0xff] }
  0xda   :  { %v559_v31 = vmax.f32 %v451_v22, %v527_v28  ;;  %v1881_v22 = vld [vmem:[%s3926_s7 + $0x40] sm:$0xff]  ;;  %v1884_v28 = vld [vmem:[%s3926_s7 + $0x58] sm:$0xff] }
  0xdd   :  { %v452_v27 = vpop.f32.mrf.mxu0  ;;  %1403 = vperm.xlu1 %2607, %v1297_v23   ;;  %v2513_v23 = vld [vmem:[%s3920_s1 + $0x68] sm:$0xff] }
  0xde   :  { %v453_v29 = vadd.f32 %v452_v27, %v141_v26  ;;  %1398 = vperm.xlu0 %2606, %v1296_v24   ;;  %1408 = vperm.xlu2 %2608, %v1298_v25   ;;  %v3158_v25 = vpop.permute.xlu1 %275  ;;  %v1883_v26 = vld [vmem:[%s3926_s7 + $0x50] sm:$0xff]  ;;  %v1882_v27 = vld [vmem:[%s3926_s7 + $0x48] sm:$0xff] }
  0xe0   :  { %v528_v30 = vmul.f32 0.01, %v453_v29 }
  0xe2   :  { %v560_v32 = vmax.f32 %v453_v29, %v528_v30  ;;  %v3169_v30 = vpop.permute.xlu0 %265 }
  0xe4   :  { %v3069_v35 = vpack.c.bf16 %v560_v32, %v559_v31  ;;  %v1886_v31 = vld [vmem:[%s3926_s7 + $0x68] sm:$0xff]  ;;  %v1885_v32 = vld [vmem:[%s3926_s7 + $0x60] sm:$0xff] }
  0xe5   :  { %v455_v40 = vpop.f32.mrf.mxu0  ;;  %1418 = vperm.xlu1 %2607, %v1300_v34   ;;  %v1887_v34 = vld [vmem:[%s3926_s7 + $0x70] sm:$0xff] }
  0xe6   :  { %1413 = vperm.xlu0 %2606, %v1299_v36   ;;  %1423 = vperm.xlu2 %2608, %v1301_v38   ;;  %v456_v41 = vadd.f32 %v455_v40, %v146_v15  ;;  %v1877_v15 = vld [vmem:[%s3926_s7 + $0x20] sm:$0xff]  ;;  %v2514_v36 = vld [vmem:[%s3920_s1 + $0x70] sm:$0xff]  ;;  %v3183_v38 = vpop.permute.xlu1 %270 }
  0xe8   :  { %2238 = vmatmul.msk.bf16.gmra.mxu0 %vm363_vm0, %v2510_v39  ;;  %v529_v49 = vmul.f32 0.01, %v456_v41 }
  0xea   :  { %v561_v55 = vmax.f32 %v456_v41, %v529_v49  ;;  %v3186_v40 = vpop.permute.xlu0 %260  ;;  %v1889_v41 = vld [vmem:[%s3926_s7 + $0x80] sm:$0xff]  ;;  %v1892_v49 = vld [vmem:[%s3926_s7 + $0x98] sm:$0xff] }
  0xed   :  { %v457_v48 = vpop.f32.mrf.mxu0  ;;  %1433 = vperm.xlu1 %2607, %v1303_v44   ;;  %v1888_v44 = vld [vmem:[%s3926_s7 + $0x78] sm:$0xff] }
  0xee   :  { %v458_v50 = vadd.f32 %v457_v48, %v3014_v58  ;;  %1428 = vperm.xlu0 %2606, %v1302_v45   ;;  %1438 = vperm.xlu2 %2608, %v1304_v46   ;;  %v1307_v58 = vld [vmem:[%s3925_s6 + $0xe0] sm:$0xff]  ;;  %v1890_v45 = vld [vmem:[%s3926_s7 + $0x88] sm:$0xff]  ;;  %v3197_v48 = vpop.permute.xlu1 %245 }
  0xf0   :  { %v530_v51 = vmul.f32 0.01, %v458_v50 }
  0xf2   :  { %v562_v56 = vmax.f32 %v458_v50, %v530_v51  ;;  %v3202_v50 = vpop.permute.xlu2 %280  ;;  %v1891_v51 = vld [vmem:[%s3926_s7 + $0x90] sm:$0xff] }
  0xf4   :  { %v3094_v60 = vpack.c.bf16 %v562_v56, %v561_v55  ;;  %v1893_v55 = vld [vmem:[%s3926_s7 + $0xa0] sm:$0xff]  ;;  %v2515_v56 = vld [vmem:[%s3920_s1 + $0x78] sm:$0xff] }
  0xf5   :  { %v460_v63 = vpop.f32.mrf.mxu0  ;;  %1448 = vperm.xlu1 %2607, %v1306_v57   ;;  %v3213_v57 = vpop.permute.xlu0 %235 }
  0xf6   :  { %1443 = vperm.xlu0 %2606, %v1305_v61   ;;  %1453 = vperm.xlu2 %2608, %v1307_v58   ;;  %v461_v0 = vadd.f32 %v460_v63, %v2998_v52  ;;  %v3216_v58 = vpop.permute.xlu1 %240  ;;  %v1895_v63 = vld [vmem:[%s3926_s7 + $0xb0] sm:$0xff] }
  0xf8   :  { %2239 = vmatmul.msk.bf16.gmra.mxu0 %vm363_vm0, %v2511_v62  ;;  %v531_v6 = vmul.f32 0.01, %v461_v0 }
  0xfa   :  { %v563_v8 = vmax.f32 %v461_v0, %v531_v6 }
  0xfd   :  { %v462_v5 = vpop.f32.mrf.mxu0  ;;  %1463 = vperm.xlu1 %2607, %v1309_v1   ;;  %v1894_v1 = vld [vmem:[%s3926_s7 + $0xa8] sm:$0xff] }
  0xfe   :  { %v463_v7 = vadd.f32 %v462_v5, %v3003_v54  ;;  %1458 = vperm.xlu0 %2606, %v1308_v2   ;;  %1468 = vperm.xlu2 %2608, %v1310_v4   ;;  %v1875_v54 = vld [vmem:[%s3926_s7 + $0x10] sm:$0xff]  ;;  %v1896_v2 = vld [vmem:[%s3926_s7 + $0xb8] sm:$0xff] }
 0x100   :  { %v532_v52 = vmul.f32 0.01, %v463_v7 }
 0x102   :  { %v564_v9 = vmax.f32 %v463_v7, %v532_v52  ;;  %v3231_v7 = vpop.permute.xlu2 %255  ;;  %v3233_v52 = vpop.permute.xlu0 %230 }
 0x104   :  { %v3120_v11 = vpack.c.bf16 %v564_v9, %v563_v8 }
 0x105   :  { %v3131_v14 = vpop.f32.mrf.mxu0  ;;  %1912 = vperm.xlu1 %2607, %v1874_v10  }
 0x106   :  { %1907 = vperm.xlu0 %2606, %v1873_v12   ;;  %1917 = vperm.xlu2 %2608, %v1875_v54  }
 0x108   :  { %2240 = vmatmul.msk.bf16.gmra.mxu0 %vm363_vm0, %v2512_v13 }
 0x10d   :  { %v3143_v19 = vpop.f32.mrf.mxu0  ;;  %1927 = vperm.xlu1 %2607, %v1877_v15  }
 0x10e   :  { %1922 = vperm.xlu0 %2606, %v1876_v16   ;;  %1932 = vperm.xlu2 %2608, %v1878_v18  }
 0x115   :  { %v470_v24 = vpop.f32.mrf.mxu0  ;;  %1942 = vperm.xlu1 %2607, %v1880_v20  }
 0x116   :  { %1937 = vperm.xlu0 %2606, %v1879_v21   ;;  %1947 = vperm.xlu2 %2608, %v1881_v22   ;;  %v471_v10 = vadd.f32 %v470_v24, %v2956_v37  ;;  %v1897_v37 = vld [vmem:[%s3926_s7 + $0xc0] sm:$0xff]  ;;  %v466_v21 = vadd.f32 %v3131_v14, %v2984_v47 }
 0x118   :  { %2241 = vmatmul.msk.bf16.gmra.mxu0 %vm363_vm0, %v2513_v23  ;;  %v535_v22 = vmul.f32 0.01, %v471_v10  ;;  %v533_v47 = vmul.f32 0.01, %v466_v21 }
 0x11a   :  { %v567_v14 = vmax.f32 %v471_v10, %v535_v22 }
 0x11d   :  { %v472_v29 = vpop.f32.mrf.mxu0  ;;  %1957 = vperm.xlu1 %2607, %v1883_v26  }
 0x11e   :  { %1952 = vperm.xlu0 %2606, %v1882_v27   ;;  %1962 = vperm.xlu2 %2608, %v1884_v28   ;;  %v3252_v27 = vpop.permute.xlu2 %250  ;;  %v206_v28 = vpop.permute.xlu0 %205 }
 0x125   :  { %v475_v39 = vpop.f32.mrf.mxu0  ;;  %1972 = vperm.xlu1 %2607, %v1886_v31  }
 0x126   :  { %1967 = vperm.xlu0 %2606, %v1885_v32   ;;  %1977 = vperm.xlu2 %2608, %v1887_v34   ;;  %v476_v5 = vadd.f32 %v475_v39, %v3000_v53  ;;  %v3237_v53 = vpop.permute.xlu1 %215  ;;  %v1901_v39 = vld [vmem:[%s3926_s7 + $0xe0] sm:$0xff] }
 0x128   :  { %2242 = vmatmul.msk.bf16.gmra.mxu0 %vm363_vm0, %v2514_v36  ;;  %v537_v12 = vmul.f32 0.01, %v476_v5 }
 0x12a   :  { %v569_v23 = vmax.f32 %v476_v5, %v537_v12  ;;  %v2294_v12 = vld [vmem:[%s3922_s3 + $0x60] sm:$0xf] }
 0x12d   :  { %v477_v46 = vpop.f32.mrf.mxu0  ;;  %1987 = vperm.xlu1 %2607, %v1889_v41   ;;  %v1900_v41 = vld [vmem:[%s3926_s7 + $0xd8] sm:$0xff] }
 0x12e   :  { %1982 = vperm.xlu0 %2606, %v1888_v44   ;;  %1992 = vperm.xlu2 %2608, %v1890_v45   ;;  %v478_v0 = vadd.f32 %v477_v46, %v3016_v59  ;;  %v473_v59 = vadd.f32 %v472_v29, %v2973_v43  ;;  %v1898_v43 = vld [vmem:[%s3926_s7 + $0xc8] sm:$0xff]  ;;  %v211_v34 = vpop.permute.xlu1 %210  ;;  %v565_v44 = vmax.f32 %v466_v21, %v533_v47  ;;  %v2342_v47 = vld [vmem:[%s3922_s3 + $0xc0] sm:$0xf] }
 0x130   :  { %v538_v8 = vmul.f32 0.01, %v478_v0  ;;  %v536_v15 = vmul.f32 0.01, %v473_v59 }
 0x132   :  { %v570_v16 = vmax.f32 %v478_v0, %v538_v8  ;;  %v568_v24 = vmax.f32 %v473_v59, %v536_v15  ;;  %v2254_v8 = vld [vmem:[%s3922_s3 + $0x10] sm:$0xf] }
 0x134   :  { %v627_v26 = vpack.c.bf16 %v570_v16, %v569_v23  ;;  %v626_v32 = vpack.c.bf16 %v568_v24, %v567_v14 }
 0x135   :  { %v480_v61 = vpop.f32.mrf.mxu0  ;;  %2002 = vperm.xlu1 %2607, %v1892_v49   ;;  %v1902_v49 = vld [vmem:[%s3926_s7 + $0xe8] sm:$0xff] }
 0x136   :  { %1997 = vperm.xlu0 %2606, %v1891_v51   ;;  %2007 = vperm.xlu2 %2608, %v1893_v55   ;;  %v481_v62 = vadd.f32 %v480_v61, %v2945_v33 }
 0x138   :  { %2243 = vmatmul.msk.bf16.gmra.mxu0 %vm363_vm0, %v2515_v56  ;;  %v539_v6 = vmul.f32 0.01, %v481_v62 }
 0x13a   :  { %v571_v54 = vmax.f32 %v481_v62, %v539_v6  ;;  %v226_v62 = vpop.permute.xlu2 %225  ;;  %v2246_v6 = vld [vmem:[%s3922_s3] sm:$0xf] }
 0x13d   :  { %v482_v4 = vpop.f32.mrf.mxu0  ;;  %2017 = vperm.xlu1 %2607, %v1895_v63  }
 0x13e   :  { %v483_v33 = vadd.f32 %v482_v4, %v2970_v42  ;;  %2012 = vperm.xlu0 %2606, %v1894_v1   ;;  %2022 = vperm.xlu2 %2608, %v1896_v2   ;;  %v468_v42 = vadd.f32 %v3143_v19, %v3031_v3  ;;  %v1899_v3 = vld [vmem:[%s3926_s7 + $0xd0] sm:$0xff]  ;;  %v1904_v1 = vld [vmem:[%s3926_s7 + $0xf8] sm:$0xff]  ;;  %v2134_v4 = vld [vmem:[#allocation2] sm:$0x1] }
 0x13f   :  { %v1903_v2 = vld [vmem:[%s3926_s7 + $0xf0] sm:$0xff] }
 0x140   :  { %v540_v9 = vmul.f32 0.01, %v483_v33  ;;  %v534_v19 = vmul.f32 0.01, %v468_v42 }
 0x142   :  { %v572_v13 = vmax.f32 %v483_v33, %v540_v9  ;;  %v566_v31 = vmax.f32 %v468_v42, %v534_v19  ;;  %v221_v33 = vpop.permute.xlu2 %220  ;;  %v2519_v9 = vld [vmem:[%s3922_s3 + $0x14] sm:$0xf0] }
 0x143   :  { %v2255_v16 = vor.u32 %v2519_v9, %v2254_v8  ;;  %v2525_v8 = vld [vmem:[%s3922_s3 + $0x44] sm:$0xf0]  ;;  %v2318_v9 = vld [vmem:[%s3922_s3 + $0x90] sm:$0xf] }
 0x144   :  { %v628_v18 = vpack.c.bf16 %v572_v13, %v571_v54  ;;  %v625_v51 = vpack.c.bf16 %v566_v31, %v565_v44  ;;  %v2529_v54 = vld [vmem:[%s3922_s3 + $0x64] sm:$0xf0]  ;;  %v2334_v13 = vld [vmem:[%s3922_s3 + $0xb0] sm:$0xf] }
 0x145   :  { %v485_v20 = vpop.f32.mrf.mxu0  ;;  %2032 = vperm.xlu1 %2607, %v1898_v43  }
 0x146   :  { %989 = vmatpush.bf16.msrb.mxu0 %v628_v18  ;;  %2580 = vmatpush.bf16.msra.mxu1 %v628_v18  ;;  %v486_v29 = vadd.f32 %v485_v20, %v206_v28  ;;  %v2531_v28 = vld [vmem:[%s3922_s3 + $0x74] sm:$0xf0] }
 0x147   :  { %2581 = vmatpush.bf16.msra.mxu2 %v628_v18  ;;  %2582 = vmatpush.bf16.msra.mxu3 %v628_v18  ;;  %v2295_v18 = vor.u32 %v2529_v54, %v2294_v12  ;;  %v2545_v12 = vld [vmem:[%s3922_s3 + $0xe4] sm:$0xf0] }
 0x148   :  { %2027 = vperm.xlu0 %2606, %v1897_v37   ;;  %2037 = vperm.xlu2 %2608, %v1899_v3   ;;  %v541_v45 = vmul.f32 0.01, %v486_v29  ;;  %v2262_v3 = vld [vmem:[%s3922_s3 + $0x20] sm:$0xf] }
 0x14a   :  { %990 = vmatpush.bf16.msrb.mxu0 %v627_v26  ;;  %2583 = vmatpush.bf16.msra.mxu1 %v627_v26  ;;  %v573_v56 = vmax.f32 %v486_v29, %v541_v45 }
 0x14b   :  { %2584 = vmatpush.bf16.msra.mxu2 %v627_v26  ;;  %2585 = vmatpush.bf16.msra.mxu3 %v627_v26  ;;  %v2302_v26 = vld [vmem:[%s3922_s3 + $0x70] sm:$0xf] }
 0x14d   :  { %v487_v36 = vpop.f32.mrf.mxu0  ;;  %2047 = vperm.xlu1 %2607, %v1901_v39  }
 0x14e   :  { %v488_v46 = vadd.f32 %v487_v36, %v211_v34  ;;  %991 = vmatpush.bf16.msrb.mxu0 %v626_v32  ;;  %2586 = vmatpush.bf16.msra.mxu1 %v626_v32  ;;  %v2303_v34 = vor.u32 %v2531_v28, %v2302_v26 }
 0x14f   :  { %2587 = vmatpush.bf16.msra.mxu2 %v626_v32  ;;  %2588 = vmatpush.bf16.msra.mxu3 %v626_v32 }
 0x150   :  { %v542_v55 = vmul.f32 0.01, %v488_v46  ;;  %2042 = vperm.xlu0 %2606, %v1900_v41   ;;  %2052 = vperm.xlu2 %2608, %v1902_v49  }
 0x152   :  { %v574_v61 = vmax.f32 %v488_v46, %v542_v55  ;;  %992 = vmatpush.bf16.msrb.mxu0 %v625_v51  ;;  %2589 = vmatpush.bf16.msra.mxu1 %v625_v51  ;;  %v2270_v46 = vld [vmem:[%s3922_s3 + $0x30] sm:$0xf]  ;;  %v2523_v55 = vld [vmem:[%s3922_s3 + $0x34] sm:$0xf0] }
 0x153   :  { %2590 = vmatpush.bf16.msra.mxu2 %v625_v51  ;;  %2591 = vmatpush.bf16.msra.mxu3 %v625_v51 }
 0x154   :  { %v3263_v63 = vpack.c.bf16 %v574_v61, %v573_v56  ;;  %v2310_v56 = vld [vmem:[%s3922_s3 + $0x80] sm:$0xf]  ;;  %v2350_v61 = vld [vmem:[%s3922_s3 + $0xd0] sm:$0xf] }
 0x155   :  { %v490_v0 = vpop.f32.mrf.mxu0  ;;  %2062 = vperm.xlu1 %2607, %v1904_v1  }
 0x156   :  { %993 = vmatpush.bf16.msrb.mxu0 %v3120_v11  ;;  %2592 = vmatpush.bf16.msra.mxu1 %v3120_v11  ;;  %v491_v5 = vadd.f32 %v490_v0, %v3237_v53  ;;  %v2539_v53 = vld [vmem:[%s3922_s3 + $0xb4] sm:$0xf0]  ;;  %v2271_v0 = vor.u32 %v2523_v55, %v2270_v46 }
 0x157   :  { %2593 = vmatpush.bf16.msra.mxu2 %v3120_v11  ;;  %2594 = vmatpush.bf16.msra.mxu3 %v3120_v11  ;;  %v2517_v11 = vld [vmem:[%s3922_s3 + $0x4] sm:$0xf0]  ;;  %v2335_v37 = vor.u32 %v2539_v53, %v2334_v13 }
 0x158   :  { %2057 = vperm.xlu0 %2606, %v1903_v2   ;;  %2137 = vperm.xlu2 %2608, %v2134_v4   ;;  %v543_v10 = vmul.f32 0.01, %v491_v5  ;;  %v2247_v15 = vor.u32 %v2517_v11, %v2246_v6  ;;  %v2278_v11 = vld [vmem:[%s3922_s3 + $0x40] sm:$0xf] }
 0x159   :  { %v2279_v54 = vor.u32 %v2525_v8, %v2278_v11 }
 0x15a   :  { %994 = vmatpush.bf16.msrb.mxu0 %v3094_v60  ;;  %2595 = vmatpush.bf16.msra.mxu1 %v3094_v60  ;;  %v575_v20 = vmax.f32 %v491_v5, %v543_v10  ;;  %v2535_v10 = vld [vmem:[%s3922_s3 + $0x94] sm:$0xf0] }
 0x15b   :  { %2596 = vmatpush.bf16.msra.mxu2 %v3094_v60  ;;  %2597 = vmatpush.bf16.msra.mxu3 %v3094_v60  ;;  %v2319_v13 = vor.u32 %v2535_v10, %v2318_v9  ;;  %v2524_v10 = vld [vmem:[%s3922_s3 + $0x44] sm:$0xf] }
 0x15d   :  { %v492_v59 = vpop.f32.mrf.mxu0 }
 0x15e   :  { %v493_v60 = vadd.f32 %v492_v59, %v221_v33  ;;  %995 = vmatpush.bf16.msrb.mxu0 %v3069_v35  ;;  %2598 = vmatpush.bf16.msra.mxu1 %v3069_v35 }
 0x15f   :  { %2599 = vmatpush.bf16.msra.mxu2 %v3069_v35  ;;  %2600 = vmatpush.bf16.msra.mxu3 %v3069_v35 }
 0x160   :  { %v544_v42 = vmul.f32 0.01, %v493_v60 }
 0x162   :  { %v576_v43 = vmax.f32 %v493_v60, %v544_v42  ;;  %996 = vmatpush.bf16.msrb.mxu0 %v3045_v17  ;;  %2601 = vmatpush.bf16.msra.mxu1 %v3045_v17  ;;  %v2358_v60 = vld [vmem:[%s3922_s3 + $0xe0] sm:$0xf] }
 0x163   :  { %2602 = vmatpush.bf16.msra.mxu2 %v3045_v17  ;;  %2603 = vmatpush.bf16.msra.mxu3 %v3045_v17  ;;  %v2521_v17 = vld [vmem:[%s3922_s3 + $0x24] sm:$0xf0]  ;;  %v2359_v53 = vor.u32 %v2545_v12, %v2358_v60  ;;  %v2280_v60 = vld [vmem:[%s3922_s3 + $0x48] sm:$0xf0] }
 0x164   :  { %v3312_v35 = vpack.c.bf16 %v576_v43, %v575_v20  ;;  %v2263_v29 = vor.u32 %v2521_v17, %v2262_v3  ;;  %v2326_v20 = vld [vmem:[%s3922_s3 + $0xa0] sm:$0xf]  ;;  %v2537_v43 = vld [vmem:[%s3922_s3 + $0xa4] sm:$0xf0]  ;;  %v2283_v12 = vor.u32 %v2524_v10, %v2280_v60 }
 0x165   :  { %v495_v21 = vpop.f32.mrf.mxu0  ;;  %997 = vmatmul.bf16.vlgmr.msrb.gmra.mxu0 %v2247_v15  ;;  %1002 = vmatmul.bf16.vlgmr.msra.gmra.mxu1 %v2255_v16  ;;  %v2286_v16 = vld [vmem:[%s3922_s3 + $0x50] sm:$0xf] }
 0x166   :  { %1027 = vmatmul.bf16.vlgmr.msra.gmra.mxu2 %v2295_v18  ;;  %1052 = vmatmul.bf16.vlgmr.msra.gmra.mxu3 %v2335_v37  ;;  %v496_v22 = vadd.f32 %v495_v21, %v226_v62  ;;  %v2527_v18 = vld [vmem:[%s3922_s3 + $0x54] sm:$0xf0]  ;;  %v2366_v37 = vld [vmem:[%s3922_s3 + $0xf0] sm:$0xf] }
 0x167   :  { %v2547_v21 = vld [vmem:[%s3922_s3 + $0xf4] sm:$0xf0] }
 0x168   :  { %v545_v19 = vmul.f32 0.01, %v496_v22  ;;  %v2367_v3 = vor.u32 %v2547_v21, %v2366_v37 }
 0x16a   :  { %v577_v31 = vmax.f32 %v496_v22, %v545_v19  ;;  %v2287_v22 = vor.u32 %v2527_v18, %v2286_v16  ;;  %v2528_v18 = vld [vmem:[%s3922_s3 + $0x64] sm:$0xf] }
 0x16d   :  { %v497_v23 = vpop.f32.mrf.mxu0 }
 0x16e   :  { %v498_v24 = vadd.f32 %v497_v23, %v3233_v52  ;;  %v2541_v52 = vld [vmem:[%s3922_s3 + $0xc4] sm:$0xf0]  ;;  %v2327_v23 = vor.u32 %v2537_v43, %v2326_v20  ;;  %v2296_v20 = vld [vmem:[%s3922_s3 + $0x68] sm:$0xf0] }
 0x16f   :  { %v2343_v36 = vor.u32 %v2541_v52, %v2342_v47  ;;  %v2299_v43 = vor.u32 %v2528_v18, %v2296_v20 }
 0x170   :  { %v546_v14 = vmul.f32 0.01, %v498_v24 }
 0x172   :  { %v578_v32 = vmax.f32 %v498_v24, %v546_v14 }
 0x174   :  { %v3333_v39 = vpack.c.bf16 %v578_v32, %v577_v31 }
 0x175   :  { %v500_v41 = vpop.f32.mrf.mxu0  ;;  %1007 = vmatmul.bf16.gmra.mxu1 %v2263_v29 }
 0x176   :  { %1032 = vmatmul.bf16.gmra.mxu2 %v2303_v34  ;;  %1057 = vmatmul.bf16.gmra.mxu3 %v2343_v36  ;;  %v501_v44 = vadd.f32 %v500_v41, %v3213_v57  ;;  %v2533_v57 = vld [vmem:[%s3922_s3 + $0x84] sm:$0xf0] }
 0x177   :  { %v2311_v4 = vor.u32 %v2533_v57, %v2310_v56 }
 0x178   :  { %v547_v49 = vmul.f32 0.01, %v501_v44 }
 0x17a   :  { %v579_v1 = vmax.f32 %v501_v44, %v547_v49 }
 0x17d   :  { %v502_v45 = vpop.f32.mrf.mxu0 }
 0x17e   :  { %v503_v51 = vadd.f32 %v502_v45, %v3216_v58  ;;  %v2543_v58 = vld [vmem:[%s3922_s3 + $0xd4] sm:$0xf0] }
 0x17f   :  { %v2351_v5 = vor.u32 %v2543_v58, %v2350_v61 }
 0x180   :  { %v548_v62 = vmul.f32 0.01, %v503_v51 }
 0x182   :  { %v580_v2 = vmax.f32 %v503_v51, %v548_v62 }
 0x184   :  { %v3355_v6 = vpack.c.bf16 %v580_v2, %v579_v1  ;;  %v2518_v2 = vld [vmem:[%s3922_s3 + $0x14] sm:$0xf] }
 0x185   :  { %v505_v33 = vpop.f32.mrf.mxu0  ;;  %1012 = vmatmul.bf16.gmra.mxu1 %v2271_v0 }
 0x186   :  { %1037 = vmatmul.bf16.gmra.mxu2 %v2311_v4  ;;  %1062 = vmatmul.bf16.gmra.mxu3 %v2351_v5  ;;  %v506_v51 = vadd.f32 %v505_v33, %v3197_v48  ;;  %v2516_v48 = vld [vmem:[%s3922_s3 + $0x4] sm:$0xf]  ;;  %v2264_v5 = vld [vmem:[%s3922_s3 + $0x28] sm:$0xf0]  ;;  %v2522_v33 = vld [vmem:[%s3922_s3 + $0x34] sm:$0xf] }
 0x187   :  { %v2520_v4 = vld [vmem:[%s3922_s3 + $0x24] sm:$0xf] }
 0x188   :  { %v549_v57 = vmul.f32 0.01, %v506_v51 }
 0x18a   :  { %v581_v62 = vmax.f32 %v506_v51, %v549_v57 }
 0x18d   :  { %v507_v59 = vpop.f32.mrf.mxu0 }
 0x18e   :  { %v508_v46 = vadd.f32 %v507_v59, %v3252_v27  ;;  %v2248_v27 = vld [vmem:[%s3922_s3 + $0x8] sm:$0xf0]  ;;  %v2272_v59 = vld [vmem:[%s3922_s3 + $0x38] sm:$0xf0] }
 0x18f   :  { %v2251_v1 = vor.u32 %v2516_v48, %v2248_v27  ;;  %v2275_v8 = vor.u32 %v2522_v33, %v2272_v59  ;;  %v2328_v48 = vld [vmem:[%s3922_s3 + $0xa8] sm:$0xf0] }
 0x195   :  { %v510_v42 = vpop.f32.mrf.mxu0  ;;  %1017 = vmatmul.bf16.gmra.mxu1 %v2279_v54 }
 0x196   :  { %1042 = vmatmul.bf16.gmra.mxu2 %v2319_v13  ;;  %1067 = vmatmul.bf16.gmra.mxu3 %v2359_v53  ;;  %v511_v36 = vadd.f32 %v510_v42, %v3231_v7  ;;  %v2526_v53 = vld [vmem:[%s3922_s3 + $0x54] sm:$0xf]  ;;  %v2288_v42 = vld [vmem:[%s3922_s3 + $0x58] sm:$0xf0] }
 0x19d   :  { %v512_v15 = vpop.f32.mrf.mxu0 }
 0x19e   :  { %v513_v31 = vadd.f32 %v512_v15, %v3186_v40  ;;  %v2291_v15 = vor.u32 %v2526_v53, %v2288_v42  ;;  %v2538_v42 = vld [vmem:[%s3922_s3 + $0xb4] sm:$0xf] }
 0x1a5   :  { %v515_v19 = vpop.f32.mrf.mxu0  ;;  %1022 = vmatmul.bf16.gmra.mxu1 %v2287_v22  ;;  %v2530_v22 = vld [vmem:[%s3922_s3 + $0x74] sm:$0xf] }
 0x1a6   :  { %1047 = vmatmul.bf16.gmra.mxu2 %v2327_v23  ;;  %1072 = vmatmul.bf16.gmra.mxu3 %v2367_v3  ;;  %v516_v52 = vadd.f32 %v515_v19, %v3169_v30  ;;  %v551_v30 = vmul.f32 0.01, %v511_v36  ;;  %v2304_v23 = vld [vmem:[%s3922_s3 + $0x78] sm:$0xf0] }
 0x1a7   :  { %v2307_v3 = vor.u32 %v2530_v22, %v2304_v23 }
 0x1a8   :  { %v553_v41 = vmul.f32 0.01, %v516_v52  ;;  %v583_v61 = vmax.f32 %v511_v36, %v551_v30  ;;  %v677_v36 = vpop.permute.xlu0 %676 }
 0x1aa   :  { %v585_v55 = vmax.f32 %v516_v52, %v553_v41  ;;  %v672_v52 = vpop.permute.xlu2 %671  ;;  %v2534_v41 = vld [vmem:[%s3922_s3 + $0x94] sm:$0xf] }
 0x1ad   :  { %v517_v24 = vpop.f32.mrf.mxu0 }
 0x1ae   :  { %v518_v28 = vadd.f32 %v517_v24, %v3183_v38  ;;  %v2532_v24 = vld [vmem:[%s3922_s3 + $0x84] sm:$0xf] }
 0x1b0   :  { %v554_v32 = vmul.f32 0.01, %v518_v28  ;;  %v692_v33 = vpop.permute.xlu0 %691 }
 0x1b2   :  { %v586_v49 = vmax.f32 %v518_v28, %v554_v32 }
 0x1b4   :  { %v635_v40 = vpack.c.bf16 %v586_v49, %v585_v55 }
 0x1b5   :  { %v520_v17 = vpop.f32.mrf.mxu0 }
 0x1b6   :  { %v521_v26 = vadd.f32 %v520_v17, %v3158_v25  ;;  %v552_v25 = vmul.f32 0.01, %v513_v31  ;;  %v2312_v17 = vld [vmem:[%s3922_s3 + $0x88] sm:$0xf0] }
 0x1b7   :  { %v2315_v28 = vor.u32 %v2532_v24, %v2312_v17 }
 0x1b8   :  { %v555_v14 = vmul.f32 0.01, %v521_v26  ;;  %v584_v56 = vmax.f32 %v513_v31, %v552_v25 }
 0x1ba   :  { %v587_v44 = vmax.f32 %v521_v26, %v555_v14  ;;  %v634_v58 = vpack.c.bf16 %v584_v56, %v583_v61  ;;  %v682_v56 = vpop.permute.xlu1 %681 }
 0x1bd   :  { %v522_v47 = vpop.f32.mrf.mxu0 }
 0x1be   :  { %v523_v29 = vadd.f32 %v522_v47, %v3202_v50  ;;  %v550_v50 = vmul.f32 0.01, %v508_v46 }
 0x1c0   :  { %v556_v34 = vmul.f32 0.01, %v523_v29  ;;  %v582_v7 = vmax.f32 %v508_v46, %v550_v50 }
 0x1c2   :  { %v588_v45 = vmax.f32 %v523_v29, %v556_v34  ;;  %v633_v0 = vpack.c.bf16 %v582_v7, %v581_v62  ;;  %v697_v53 = vpop.permute.xlu1 %696 }
 0x1c4   :  { %v636_v38 = vpack.c.bf16 %v588_v45, %v587_v44  ;;  %v2320_v44 = vld [vmem:[%s3922_s3 + $0x98] sm:$0xf0] }
 0x1c6   :  { %1078 = vmatpush.bf16.msrb.mxu2 %v636_v38  ;;  %v2323_v38 = vor.u32 %v2534_v41, %v2320_v44  ;;  %v2344_v41 = vld [vmem:[%s3922_s3 + $0xc8] sm:$0xf0] }
 0x1ca   :  { %1079 = vmatpush.bf16.msrb.mxu2 %v635_v40 }
 0x1ce   :  { %1080 = vmatpush.bf16.msrb.mxu2 %v634_v58  ;;  %v687_v58 = vpop.permute.xlu2 %686 }
 0x1d2   :  { %1081 = vmatpush.bf16.msrb.mxu2 %v633_v0  ;;  %v2536_v0 = vld [vmem:[%s3922_s3 + $0xa4] sm:$0xf] }
 0x1d6   :  { %1082 = vmatpush.bf16.msrb.mxu2 %v3355_v6  ;;  %v702_v17 = vpop.permute.xlu2 %701 }
 0x1da   :  { %1083 = vmatpush.bf16.msrb.mxu2 %v3333_v39 }
 0x1de   :  { %1084 = vmatpush.bf16.msrb.mxu2 %v3312_v35  ;;  %v2256_v35 = vld [vmem:[%s3922_s3 + $0x18] sm:$0xf0]  ;;  %v3509_v44 = vpop.permute.xlu2 %716 }
 0x1df   :  { %v2259_v39 = vor.u32 %v2518_v2, %v2256_v35 }
 0x1e2   :  { %1085 = vmatpush.bf16.msrb.mxu2 %v3263_v63  ;;  %v2267_v63 = vor.u32 %v2520_v4, %v2264_v5  ;;  %v998_v47 = vpop.f32.mrf.mxu0  ;;  %v1003_v32 = vpop.f32.mrf.mxu1 }
 0x1e3   :  { %v999_v14 = vadd.f32 %v998_v47, %v672_v52  ;;  %v1004_v40 = vadd.f32 %v1003_v32, %v682_v56 }
 0x1e5   :  { %1086 = vmatmul.bf16.vlgmr.msrb.gmra.mxu2 %v2251_v1 }
 0x1e9   :  { %v3423_v6 = vpop.f32.mrf.mxu2 }
 0x1ea   :  { %v1000_v34 = vpop.f32.mrf.mxu0  ;;  %v1005_v30 = vpop.f32.mrf.mxu1 }
 0x1eb   :  { %v1001_v45 = vadd.f32 %v1000_v34, %v677_v36  ;;  %v1006_v27 = vadd.f32 %v1005_v30, %v687_v58  ;;  %v707_v34 = vpop.permute.xlu0 %706  ;;  %v2540_v36 = vld [vmem:[%s3922_s3 + $0xc4] sm:$0xf]  ;;  %v2352_v58 = vld [vmem:[%s3922_s3 + $0xd8] sm:$0xf0] }
 0x1f1   :  { %v3431_v11 = vpop.f32.mrf.mxu2 }
 0x1f2   :  { %v1008_v62 = vpop.f32.mrf.mxu1 }
 0x1f3   :  { %v1009_v59 = vadd.f32 %v1008_v62, %v692_v33  ;;  %v722_v56 = vpop.permute.xlu0 %721 }
 0x1f5   :  { %1091 = vmatmul.bf16.gmra.mxu2 %v2259_v39  ;;  %v2331_v39 = vor.u32 %v2536_v0, %v2328_v48 }
 0x1f9   :  { %v3433_v9 = vpop.f32.mrf.mxu2 }
 0x1fa   :  { %v1010_v10 = vpop.f32.mrf.mxu1 }
 0x1fb   :  { %v1011_v18 = vadd.f32 %v1010_v10, %v697_v53  ;;  %v742_v48 = vpop.permute.xlu0 %741 }
 0x201   :  { %v3441_v54 = vpop.f32.mrf.mxu2 }
 0x205   :  { %1096 = vmatmul.bf16.gmra.mxu2 %v2267_v63 }
 0x209   :  { %v3443_v13 = vpop.f32.mrf.mxu2 }
 0x211   :  { %v3451_v16 = vpop.f32.mrf.mxu2 }
 0x215   :  { %1101 = vmatmul.bf16.gmra.mxu2 %v2275_v8 }
 0x219   :  { %v3459_v37 = vpop.f32.mrf.mxu2 }
 0x221   :  { %v3461_v21 = vpop.f32.mrf.mxu2 }
 0x225   :  { %1106 = vmatmul.bf16.gmra.mxu2 %v2283_v12 }
 0x229   :  { %v3469_v19 = vpop.f32.mrf.mxu2 }
 0x231   :  { %v3477_v26 = vpop.f32.mrf.mxu2 }
 0x235   :  { %1111 = vmatmul.bf16.gmra.mxu2 %v2291_v15  ;;  %v2336_v15 = vld [vmem:[%s3922_s3 + $0xb8] sm:$0xf0] }
 0x236   :  { %v2339_v23 = vor.u32 %v2538_v42, %v2336_v15 }
 0x245   :  { %1116 = vmatmul.bf16.gmra.mxu2 %v2299_v43 }
 0x255   :  { %1121 = vmatmul.bf16.gmra.mxu2 %v2307_v3  ;;  %v1013_v3 = vpop.f32.mrf.mxu1 }
 0x265   :  { %1126 = vmatmul.bf16.gmra.mxu2 %v2315_v28 }
 0x268   :  { %v1087_v29 = vpop.f32.mrf.mxu2 }
 0x269   :  { %v1088_v31 = vadd.f32 %v1087_v29, %v999_v14  ;;  %v1014_v29 = vadd.f32 %v1013_v3, %v702_v17 }
 0x26b   :  { %v1167_v25 = vmul.f32 0.01, %v1088_v31 }
 0x26d   :  { %v1199_v55 = vmax.f32 %v1088_v31, %v1167_v25  ;;  %v1015_v31 = vpop.f32.mrf.mxu1 }
 0x270   :  { %v1089_v46 = vpop.f32.mrf.mxu2 }
 0x271   :  { %v1090_v49 = vadd.f32 %v1089_v46, %v1001_v45  ;;  %v1016_v45 = vadd.f32 %v1015_v31, %v707_v34 }
 0x273   :  { %v1168_v51 = vmul.f32 0.01, %v1090_v49 }
 0x275   :  { %1131 = vmatmul.bf16.gmra.mxu2 %v2323_v38  ;;  %v1200_v50 = vmax.f32 %v1090_v49, %v1168_v51  ;;  %v2347_v38 = vor.u32 %v2540_v36, %v2344_v41 }
 0x277   :  { %v3485_v57 = vpack.c.bf16 %v1200_v50, %v1199_v55 }
 0x278   :  { %v1092_v61 = vpop.f32.mrf.mxu2 }
 0x279   :  { %v1093_v7 = vadd.f32 %v1092_v61, %v1004_v40  ;;  %v732_v61 = vpop.permute.xlu2 %731 }
 0x27a   :  { %v1029_v36 = vadd.f32 %v3423_v6, %v732_v61 }
 0x27b   :  { %v1169_v2 = vmul.f32 0.01, %v1093_v7 }
 0x27d   :  { %v1201_v5 = vmax.f32 %v1093_v7, %v1169_v2  ;;  %v2542_v7 = vld [vmem:[%s3922_s3 + $0xd4] sm:$0xf] }
 0x27e   :  { %v2355_v0 = vor.u32 %v2542_v7, %v2352_v58 }
 0x280   :  { %v1094_v1 = vpop.f32.mrf.mxu2 }
 0x281   :  { %v1095_v35 = vadd.f32 %v1094_v1, %v1006_v27  ;;  %v737_v27 = vpop.permute.xlu2 %736  ;;  %v712_v1 = vpop.permute.xlu1 %711 }
 0x282   :  { %v1031_v31 = vadd.f32 %v3431_v11, %v737_v27 }
 0x283   :  { %v1170_v4 = vmul.f32 0.01, %v1095_v35 }
 0x285   :  { %1136 = vmatmul.bf16.gmra.mxu2 %v2331_v39  ;;  %v1202_v63 = vmax.f32 %v1095_v35, %v1170_v4  ;;  %v3521_v35 = vpop.permute.xlu0 %821  ;;  %v2544_v4 = vld [vmem:[%s3922_s3 + $0xe4] sm:$0xf] }
 0x287   :  { %v3493_v8 = vpack.c.bf16 %v1202_v63, %v1201_v5  ;;  %v2360_v5 = vld [vmem:[%s3922_s3 + $0xe8] sm:$0xf0]  ;;  %v1018_v63 = vpop.f32.mrf.mxu1 }
 0x288   :  { %v1097_v60 = vpop.f32.mrf.mxu2 }
 0x289   :  { %v1098_v12 = vadd.f32 %v1097_v60, %v1009_v59  ;;  %v3523_v39 = vpop.permute.xlu2 %811  ;;  %v2363_v59 = vor.u32 %v2544_v4, %v2360_v5  ;;  %v727_v10 = vpop.permute.xlu1 %726  ;;  %v1019_v5 = vadd.f32 %v1018_v63, %v712_v1 }
 0x28b   :  { %v1171_v43 = vmul.f32 0.01, %v1098_v12 }
 0x28d   :  { %v1203_v28 = vmax.f32 %v1098_v12, %v1171_v43  ;;  %v3531_v60 = vpop.permute.xlu0 %816 }
 0x28f   :  { %v1020_v42 = vpop.f32.mrf.mxu1 }
 0x290   :  { %v1099_v20 = vpop.f32.mrf.mxu2  ;;  %v1021_v11 = vadd.f32 %v1020_v42, %v3509_v44 }
 0x291   :  { %v1100_v22 = vadd.f32 %v1099_v20, %v1011_v18  ;;  %v3533_v12 = vpop.permute.xlu2 %806  ;;  %v747_v15 = vpop.permute.xlu1 %746  ;;  %v2546_v18 = vld [vmem:[%s3922_s3 + $0xf4] sm:$0xf]  ;;  %v2368_v20 = vld [vmem:[%s3922_s3 + $0xf8] sm:$0xf0] }
 0x292   :  { %v2371_v3 = vor.u32 %v2546_v18, %v2368_v20  ;;  %v1036_v41 = vadd.f32 %v3441_v54, %v747_v15 }
 0x293   :  { %v1172_v24 = vmul.f32 0.01, %v1100_v22 }
 0x295   :  { %1141 = vmatmul.bf16.gmra.mxu2 %v2339_v23  ;;  %v1204_v47 = vmax.f32 %v1100_v22, %v1172_v24  ;;  %v3541_v43 = vpop.permute.xlu0 %791 }
 0x297   :  { %v3501_v52 = vpack.c.bf16 %v1204_v47, %v1203_v28  ;;  %v1023_v24 = vpop.f32.mrf.mxu1 }
 0x298   :  { %v1102_v14 = vpop.f32.mrf.mxu2 }
 0x299   :  { %v1103_v32 = vadd.f32 %v1102_v14, %v1014_v29  ;;  %v3543_v23 = vpop.permute.xlu2 %781  ;;  %v3545_v17 = vpop.permute.xlu1 %826  ;;  %v1034_v29 = vadd.f32 %v3433_v9, %v742_v48 }
 0x29b   :  { %v1173_v25 = vmul.f32 0.01, %v1103_v32 }
 0x29d   :  { %v1205_v30 = vmax.f32 %v1103_v32, %v1173_v25  ;;  %v3547_v47 = vpop.permute.xlu0 %786 }
 0x29f   :  { %v1025_v34 = vpop.f32.mrf.mxu1 }
 0x2a0   :  { %v1104_v46 = vpop.f32.mrf.mxu2 }
 0x2a1   :  { %v1105_v49 = vadd.f32 %v1104_v46, %v1016_v45  ;;  %v3549_v14 = vpop.permute.xlu2 %776  ;;  %v3555_v46 = vpop.permute.xlu1 %801 }
 0x2a3   :  { %v1174_v51 = vmul.f32 0.01, %v1105_v49 }
 0x2a5   :  { %1146 = vmatmul.bf16.gmra.mxu2 %v2347_v38  ;;  %v1206_v55 = vmax.f32 %v1105_v49, %v1174_v51  ;;  %v1026_v49 = vadd.f32 %v1025_v34, %v727_v10 }
 0x2a7   :  { %v3511_v50 = vpack.c.bf16 %v1206_v55, %v1205_v30  ;;  %v1024_v55 = vadd.f32 %v1023_v24, %v722_v56 }
 0x2a8   :  { %v3513_v40 = vpop.f32.mrf.mxu2 }
 0x2a9   :  { %v752_v48 = vpop.permute.xlu2 %751  ;;  %v1108_v56 = vadd.f32 %v3513_v40, %v1019_v5  ;;  %v3560_v44 = vpop.permute.xlu1 %796 }
 0x2aa   :  { %v1039_v4 = vadd.f32 %v3443_v13, %v752_v48 }
 0x2ab   :  { %v1175_v24 = vmul.f32 0.01, %v1108_v56 }
 0x2b0   :  { %v1109_v62 = vpop.f32.mrf.mxu2 }
 0x2b5   :  { %1151 = vmatmul.bf16.gmra.mxu2 %v2355_v0  ;;  %v762_v0 = vpop.permute.xlu0 %761 }
 0x2b8   :  { %v1112_v2 = vpop.f32.mrf.mxu2 }
 0x2b9   :  { %v1113_v27 = vadd.f32 %v1112_v2, %v1024_v55 }
 0x2bd   :  { %v757_v13 = vpop.permute.xlu0 %756 }
 0x2c0   :  { %v1114_v33 = vpop.f32.mrf.mxu2 }
 0x2c1   :  { %v1115_v7 = vadd.f32 %v1114_v33, %v1026_v49  ;;  %v1177_v33 = vmul.f32 0.01, %v1113_v27  ;;  %v1044_v49 = vadd.f32 %v3459_v37, %v762_v0  ;;  %v2374_v37 = vld [vmem:[%s3924_s5] sm:$0xf]  ;;  %v2549_v0 = vld [vmem:[%s3924_s5 + $0x4] sm:$0xf0] }
 0x2c2   :  { %v2375_v48 = vor.u32 %v2549_v0, %v2374_v37  ;;  %v2414_v0 = vld [vmem:[%s3924_s5 + $0x50] sm:$0xf] }
 0x2c3   :  { %v1178_v10 = vmul.f32 0.01, %v1115_v7 }
 0x2c5   :  { %1156 = vmatmul.bf16.gmra.mxu2 %v2363_v59  ;;  %v1110_v59 = vadd.f32 %v1109_v62, %v1021_v11  ;;  %v1210_v42 = vmax.f32 %v1115_v7, %v1178_v10  ;;  %v1041_v62 = vadd.f32 %v3451_v16, %v757_v13  ;;  %v1053_v11 = vpop.f32.mrf.mxu3  ;;  %v2390_v13 = vld [vmem:[%s3924_s5 + $0x20] sm:$0xf] }
 0x2c7   :  { %v1176_v2 = vmul.f32 0.01, %v1110_v59 }
 0x2c8   :  { %v1117_v53 = vpop.f32.mrf.mxu2 }
 0x2c9   :  { %v1118_v38 = vadd.f32 %v1117_v53, %v1029_v36  ;;  %v1208_v1 = vmax.f32 %v1110_v59, %v1176_v2 }
 0x2cb   :  { %v1179_v6 = vmul.f32 0.01, %v1118_v38 }
 0x2cd   :  { %v1211_v20 = vmax.f32 %v1118_v38, %v1179_v6 }
 0x2d0   :  { %v1119_v22 = vpop.f32.mrf.mxu2 }
 0x2d1   :  { %v1120_v45 = vadd.f32 %v1119_v22, %v1031_v31  ;;  %v1207_v31 = vmax.f32 %v1108_v56, %v1175_v24 }
 0x2d3   :  { %v1180_v58 = vmul.f32 0.01, %v1120_v45  ;;  %v1267_v36 = vpack.c.bf16 %v1208_v1, %v1207_v31 }
 0x2d5   :  { %1161 = vmatmul.bf16.gmra.mxu2 %v2371_v3  ;;  %v1212_v53 = vmax.f32 %v1120_v45, %v1180_v58 }
 0x2d7   :  { %v1269_v3 = vpack.c.bf16 %v1212_v53, %v1211_v20  ;;  %v2382_v53 = vld [vmem:[%s3924_s5 + $0x10] sm:$0xf]  ;;  %v1054_v20 = vadd.f32 %v1053_v11, %v3543_v23  ;;  %v2559_v11 = vld [vmem:[%s3924_s5 + $0x54] sm:$0xf0] }
 0x2d8   :  { %v1122_v28 = vpop.f32.mrf.mxu2 }
 0x2d9   :  { %v1123_v32 = vadd.f32 %v1122_v28, %v1034_v29  ;;  %v1209_v28 = vmax.f32 %v1113_v27, %v1177_v33 }
 0x2db   :  { %v1181_v51 = vmul.f32 0.01, %v1123_v32  ;;  %v1268_v63 = vpack.c.bf16 %v1210_v42, %v1209_v28 }
 0x2dd   :  { %v1213_v61 = vmax.f32 %v1123_v32, %v1181_v51 }
 0x2e0   :  { %v1124_v25 = vpop.f32.mrf.mxu2 }
 0x2e1   :  { %v1125_v30 = vadd.f32 %v1124_v25, %v1036_v41  ;;  %v772_v41 = vpop.permute.xlu1 %771 }
 0x2e3   :  { %v1182_v9 = vmul.f32 0.01, %v1125_v30 }
 0x2e5   :  { %v1214_v54 = vmax.f32 %v1125_v30, %v1182_v9 }
 0x2e7   :  { %v1270_v15 = vpack.c.bf16 %v1214_v54, %v1213_v61  ;;  %v1055_v54 = vpop.f32.mrf.mxu3 }
 0x2e8   :  { %v1127_v18 = vpop.f32.mrf.mxu2  ;;  %v1056_v2 = vadd.f32 %v1055_v54, %v3547_v47 }
 0x2e9   :  { %v1128_v22 = vadd.f32 %v1127_v18, %v1039_v4  ;;  %1631 = vmatpush.bf16.msrb.mxu3 %v1270_v15  ;;  %v767_v16 = vpop.permute.xlu1 %766  ;;  %v1051_v4 = vadd.f32 %v3477_v26, %v3549_v14 }
 0x2ea   :  { %v1046_v55 = vadd.f32 %v3461_v21, %v767_v16  ;;  %v1049_v21 = vadd.f32 %v3469_v19, %v772_v41  ;;  %v2551_v19 = vld [vmem:[%s3924_s5 + $0x14] sm:$0xf0]  ;;  %v2398_v41 = vld [vmem:[%s3924_s5 + $0x30] sm:$0xf]  ;;  %v2406_v16 = vld [vmem:[%s3924_s5 + $0x40] sm:$0xf] }
 0x2eb   :  { %v1183_v40 = vmul.f32 0.01, %v1128_v22  ;;  %v2383_v15 = vor.u32 %v2551_v19, %v2382_v53 }
 0x2ed   :  { %1632 = vmatpush.bf16.msrb.mxu3 %v1269_v3  ;;  %v1215_v45 = vmax.f32 %v1128_v22, %v1183_v40 }
 0x2ef   :  { %v1058_v33 = vpop.f32.mrf.mxu3 }
 0x2f0   :  { %v1129_v29 = vpop.f32.mrf.mxu2  ;;  %v1059_v31 = vadd.f32 %v1058_v33, %v3541_v43 }
 0x2f1   :  { %v1130_v32 = vadd.f32 %v1129_v29, %v1041_v62  ;;  %1633 = vmatpush.bf16.msrb.mxu3 %v1268_v63  ;;  %v2553_v62 = vld [vmem:[%s3924_s5 + $0x24] sm:$0xf0] }
 0x2f2   :  { %v2391_v1 = vor.u32 %v2553_v62, %v2390_v13 }
 0x2f3   :  { %v1184_v34 = vmul.f32 0.01, %v1130_v32 }
 0x2f5   :  { %v1216_v25 = vmax.f32 %v1130_v32, %v1184_v34  ;;  %1634 = vmatpush.bf16.msrb.mxu3 %v1267_v36 }
 0x2f7   :  { %v3564_v38 = vpack.c.bf16 %v1216_v25, %v1215_v45  ;;  %v1060_v42 = vpop.f32.mrf.mxu3  ;;  %v2555_v45 = vld [vmem:[%s3924_s5 + $0x34] sm:$0xf0] }
 0x2f8   :  { %v1132_v51 = vpop.f32.mrf.mxu2 }
 0x2f9   :  { %v1133_v30 = vadd.f32 %v1132_v51, %v1044_v49  ;;  %1635 = vmatpush.bf16.msrb.mxu3 %v3511_v50  ;;  %v2399_v49 = vor.u32 %v2555_v45, %v2398_v41  ;;  %v2565_v45 = vld [vmem:[%s3924_s5 + $0x84] sm:$0xf0] }
 0x2fb   :  { %v1185_v58 = vmul.f32 0.01, %v1133_v30 }
 0x2fd   :  { %1636 = vmatpush.bf16.msrb.mxu3 %v3501_v52  ;;  %v1217_v52 = vmax.f32 %v1133_v30, %v1185_v58 }
 0x2ff   :  { %v1063_v34 = vpop.f32.mrf.mxu3 }
 0x300   :  { %v1134_v7 = vpop.f32.mrf.mxu2 }
 0x301   :  { %v1135_v9 = vadd.f32 %v1134_v7, %v1046_v55  ;;  %1637 = vmatpush.bf16.msrb.mxu3 %v3493_v8  ;;  %v2557_v55 = vld [vmem:[%s3924_s5 + $0x44] sm:$0xf0] }
 0x302   :  { %v2407_v7 = vor.u32 %v2557_v55, %v2406_v16  ;;  %v2454_v55 = vld [vmem:[%s3924_s5 + $0xa0] sm:$0xf] }
 0x303   :  { %v1186_v50 = vmul.f32 0.01, %v1135_v9 }
 0x305   :  { %v1218_v27 = vmax.f32 %v1135_v9, %v1186_v50  ;;  %1638 = vmatpush.bf16.msrb.mxu3 %v3485_v57 }
 0x307   :  { %v3578_v6 = vpack.c.bf16 %v1218_v27, %v1217_v52  ;;  %v1065_v25 = vpop.f32.mrf.mxu3 }
 0x308   :  { %v1137_v8 = vpop.f32.mrf.mxu2  ;;  %1639 = vmatmul.bf16.vlgmr.msrb.gmra.mxu3 %v2375_v48  ;;  %v2415_v48 = vor.u32 %v2559_v11, %v2414_v0 }
 0x309   :  { %v1138_v61 = vadd.f32 %v1137_v8, %v1049_v21 }
 0x30b   :  { %v1187_v59 = vmul.f32 0.01, %v1138_v61 }
 0x30d   :  { %v1219_v18 = vmax.f32 %v1138_v61, %v1187_v59 }
 0x30f   :  { %v1068_v43 = vpop.f32.mrf.mxu3 }
 0x310   :  { %v1139_v5 = vpop.f32.mrf.mxu2  ;;  %v1069_v54 = vadd.f32 %v1068_v43, %v3523_v39  ;;  %v2550_v43 = vld [vmem:[%s3924_s5 + $0x14] sm:$0xf] }
 0x311   :  { %v1140_v10 = vadd.f32 %v1139_v5, %v1051_v4 }
 0x313   :  { %v1188_v57 = vmul.f32 0.01, %v1140_v10 }
 0x315   :  { %v1220_v56 = vmax.f32 %v1140_v10, %v1188_v57  ;;  %v1066_v10 = vadd.f32 %v1065_v25, %v3533_v12  ;;  %v2548_v25 = vld [vmem:[%s3924_s5 + $0x4] sm:$0xf] }
 0x317   :  { %v3589_v22 = vpack.c.bf16 %v1220_v56, %v1219_v18  ;;  %v1070_v58 = vpop.f32.mrf.mxu3  ;;  %v1061_v56 = vadd.f32 %v1060_v42, %v3560_v44 }
 0x318   :  { %v1142_v26 = vpop.f32.mrf.mxu2  ;;  %1644 = vmatmul.bf16.gmra.mxu3 %v2383_v15  ;;  %v1071_v8 = vadd.f32 %v1070_v58, %v3531_v60  ;;  %v2422_v15 = vld [vmem:[%s3924_s5 + $0x60] sm:$0xf]  ;;  %v1064_v60 = vadd.f32 %v1063_v34, %v3555_v46  ;;  %v2563_v34 = vld [vmem:[%s3924_s5 + $0x74] sm:$0xf0]  ;;  %v2552_v58 = vld [vmem:[%s3924_s5 + $0x24] sm:$0xf] }
 0x319   :  { %v1143_v14 = vadd.f32 %v1142_v26, %v1054_v20 }
 0x31b   :  { %v1189_v24 = vmul.f32 0.01, %v1143_v14 }
 0x31d   :  { %v1221_v63 = vmax.f32 %v1143_v14, %v1189_v24 }
 0x31f   :  { %v1073_v50 = vpop.f32.mrf.mxu3 }
 0x320   :  { %v1144_v3 = vpop.f32.mrf.mxu2  ;;  %v1074_v27 = vadd.f32 %v1073_v50, %v3521_v35  ;;  %v2561_v35 = vld [vmem:[%s3924_s5 + $0x64] sm:$0xf0]  ;;  %v3684_v50 = vpop.permute.xlu2 %1318 }
 0x321   :  { %v1145_v28 = vadd.f32 %v1144_v3, %v1056_v2  ;;  %v2423_v33 = vor.u32 %v2561_v35, %v2422_v15  ;;  %v2573_v35 = vld [vmem:[%s3924_s5 + $0xc4] sm:$0xf0] }
 0x323   :  { %v1190_v23 = vmul.f32 0.01, %v1145_v28 }
 0x325   :  { %v1222_v29 = vmax.f32 %v1145_v28, %v1190_v23 }
 0x327   :  { %v3599_v40 = vpack.c.bf16 %v1222_v29, %v1221_v63  ;;  %v1075_v21 = vpop.f32.mrf.mxu3 }
 0x328   :  { %v1147_v47 = vpop.f32.mrf.mxu2  ;;  %1649 = vmatmul.bf16.gmra.mxu3 %v2391_v1  ;;  %v1076_v4 = vadd.f32 %v1075_v21, %v3545_v17  ;;  %v2571_v21 = vld [vmem:[%s3924_s5 + $0xb4] sm:$0xf0] }
 0x329   :  { %v3601_v32 = vadd.f32 %v1147_v47, %v1059_v31  ;;  %v2430_v47 = vld [vmem:[%s3924_s5 + $0x70] sm:$0xf] }
 0x32a   :  { %v2431_v41 = vor.u32 %v2563_v34, %v2430_v47  ;;  %v2577_v34 = vld [vmem:[%s3924_s5 + $0xe4] sm:$0xf0] }
 0x32b   :  { %v1191_v63 = vmul.f32 0.01, %v3601_v32 }
 0x32d   :  { %v1223_v31 = vmax.f32 %v3601_v32, %v1191_v63  ;;  %v2438_v32 = vld [vmem:[%s3924_s5 + $0x80] sm:$0xf] }
 0x330   :  { %v1149_v36 = vpop.f32.mrf.mxu2 }
 0x331   :  { %v1150_v2 = vadd.f32 %v1149_v36, %v1061_v56 }
 0x333   :  { %v1192_v23 = vmul.f32 0.01, %v1150_v2 }
 0x335   :  { %v1224_v44 = vmax.f32 %v1150_v2, %v1192_v23 }
 0x337   :  { %v1275_v36 = vpack.c.bf16 %v1224_v44, %v1223_v31  ;;  %v2486_v31 = vld [vmem:[%s3924_s5 + $0xe0] sm:$0xf] }
 0x338   :  { %v1152_v51 = vpop.f32.mrf.mxu2  ;;  %1654 = vmatmul.bf16.gmra.mxu3 %v2399_v49  ;;  %v2439_v49 = vor.u32 %v2565_v45, %v2438_v32  ;;  %v2487_v45 = vor.u32 %v2577_v34, %v2486_v31 }
 0x339   :  { %v1153_v12 = vadd.f32 %v1152_v51, %v1064_v60  ;;  %v2567_v51 = vld [vmem:[%s3924_s5 + $0x94] sm:$0xf0]  ;;  %v2556_v60 = vld [vmem:[%s3924_s5 + $0x44] sm:$0xf] }
 0x33b   :  { %v1193_v13 = vmul.f32 0.01, %v1153_v12 }
 0x33d   :  { %v1225_v29 = vmax.f32 %v1153_v12, %v1193_v13  ;;  %v2416_v13 = vld [vmem:[%s3924_s5 + $0x58] sm:$0xf0] }
 0x340   :  { %v1154_v30 = vpop.f32.mrf.mxu2 }
 0x341   :  { %v1155_v39 = vadd.f32 %v1154_v30, %v1066_v10  ;;  %v2384_v30 = vld [vmem:[%s3924_s5 + $0x18] sm:$0xf0] }
 0x343   :  { %v1194_v3 = vmul.f32 0.01, %v1155_v39 }
 0x345   :  { %v1226_v46 = vmax.f32 %v1155_v39, %v1194_v3  ;;  %v2408_v39 = vld [vmem:[%s3924_s5 + $0x48] sm:$0xf0]  ;;  %v2478_v3 = vld [vmem:[%s3924_s5 + $0xd0] sm:$0xf] }
 0x347   :  { %v1276_v42 = vpack.c.bf16 %v1226_v46, %v1225_v29 }
 0x348   :  { %v1157_v9 = vpop.f32.mrf.mxu2  ;;  %1659 = vmatmul.bf16.gmra.mxu3 %v2407_v7  ;;  %v2569_v7 = vld [vmem:[%s3924_s5 + $0xa4] sm:$0xf0] }
 0x349   :  { %v1158_v53 = vadd.f32 %v1157_v9, %v1069_v54  ;;  %v2392_v9 = vld [vmem:[%s3924_s5 + $0x28] sm:$0xf0]  ;;  %v2455_v0 = vor.u32 %v2569_v7, %v2454_v55 }
 0x34a   :  { %v2395_v11 = vor.u32 %v2552_v58, %v2392_v9 }
 0x34b   :  { %v1195_v20 = vmul.f32 0.01, %v1158_v53 }
 0x34d   :  { %v1227_v62 = vmax.f32 %v1158_v53, %v1195_v20 }
 0x350   :  { %v1159_v37 = vpop.f32.mrf.mxu2 }
 0x351   :  { %v1160_v5 = vadd.f32 %v1159_v37, %v1071_v8  ;;  %v3682_v37 = vpop.permute.xlu1 %1313  ;;  %v2554_v8 = vld [vmem:[%s3924_s5 + $0x34] sm:$0xf] }
 0x353   :  { %v1196_v18 = vmul.f32 0.01, %v1160_v5 }
 0x355   :  { %v1228_v24 = vmax.f32 %v1160_v5, %v1196_v18 }
 0x357   :  { %v1277_v1 = vpack.c.bf16 %v1228_v24, %v1227_v62  ;;  %v2575_v24 = vld [vmem:[%s3924_s5 + $0xd4] sm:$0xf0] }
 0x358   :  { %v1162_v52 = vpop.f32.mrf.mxu2  ;;  %1664 = vmatmul.bf16.gmra.mxu3 %v2415_v48  ;;  %v2479_v62 = vor.u32 %v2575_v24, %v2478_v3 }
 0x359   :  { %v1163_v61 = vadd.f32 %v1162_v52, %v1074_v27  ;;  %v3686_v48 = vpop.permute.xlu1 %1328  ;;  %v3688_v52 = vpop.permute.xlu0 %1323  ;;  %v2462_v27 = vld [vmem:[%s3924_s5 + $0xb0] sm:$0xf] }
 0x35b   :  { %v1197_v19 = vmul.f32 0.01, %v1163_v61 }
 0x35d   :  { %v1229_v26 = vmax.f32 %v1163_v61, %v1197_v19  ;;  %v2400_v61 = vld [vmem:[%s3924_s5 + $0x38] sm:$0xf0] }
 0x35e   :  { %v2403_v5 = vor.u32 %v2554_v8, %v2400_v61  ;;  %v2564_v8 = vld [vmem:[%s3924_s5 + $0x84] sm:$0xf]  ;;  %v2440_v61 = vld [vmem:[%s3924_s5 + $0x88] sm:$0xf0] }
 0x360   :  { %v1164_v59 = vpop.f32.mrf.mxu2 }
 0x361   :  { %v1165_v57 = vadd.f32 %v1164_v59, %v1076_v4  ;;  %v2463_v4 = vor.u32 %v2571_v21, %v2462_v27  ;;  %v3704_v59 = vpop.permute.xlu2 %1333  ;;  %v3706_v10 = vpop.permute.xlu1 %1343 }
 0x362   :  { %v3708_v53 = vpop.permute.xlu0 %1338 }
 0x363   :  { %v1198_v17 = vmul.f32 0.01, %v1165_v57 }
 0x365   :  { %v1230_v14 = vmax.f32 %v1165_v57, %v1198_v17  ;;  %v2470_v57 = vld [vmem:[%s3924_s5 + $0xc0] sm:$0xf] }
 0x366   :  { %v2471_v56 = vor.u32 %v2573_v35, %v2470_v57 }
 0x367   :  { %v1278_v28 = vpack.c.bf16 %v1230_v14, %v1229_v26 }
 0x368   :  { %1669 = vmatmul.bf16.gmra.mxu3 %v2423_v33  ;;  %v2411_v33 = vor.u32 %v2556_v60, %v2408_v39 }
 0x369   :  { %1720 = vmatpush.bf16.msrb.mxu1 %v1278_v28  ;;  %v3715_v15 = vpop.permute.xlu2 %1348  ;;  %v3726_v18 = vpop.permute.xlu1 %1358  ;;  %v2558_v28 = vld [vmem:[%s3924_s5 + $0x54] sm:$0xf] }
 0x36a   :  { %v3728_v17 = vpop.permute.xlu0 %1353  ;;  %v2419_v23 = vor.u32 %v2558_v28, %v2416_v13 }
 0x36d   :  { %1721 = vmatpush.bf16.msrb.mxu1 %v1277_v1 }
 0x371   :  { %1722 = vmatpush.bf16.msrb.mxu1 %v1276_v42  ;;  %v3732_v20 = vpop.permute.xlu2 %1363  ;;  %v3734_v26 = vpop.permute.xlu1 %1373 }
 0x372   :  { %v3736_v14 = vpop.permute.xlu0 %1368 }
 0x375   :  { %1723 = vmatpush.bf16.msrb.mxu1 %v1275_v36  ;;  %v2560_v36 = vld [vmem:[%s3924_s5 + $0x64] sm:$0xf] }
 0x378   :  { %1674 = vmatmul.bf16.gmra.mxu3 %v2431_v41  ;;  %v2424_v41 = vld [vmem:[%s3924_s5 + $0x68] sm:$0xf0] }
 0x379   :  { %1724 = vmatpush.bf16.msrb.mxu1 %v3599_v40  ;;  %v2376_v40 = vld [vmem:[%s3924_s5 + $0x8] sm:$0xf0]  ;;  %v3752_v46 = vpop.permute.xlu2 %1378  ;;  %v3754_v1 = vpop.permute.xlu1 %1388 }
 0x37a   :  { %v3756_v63 = vpop.permute.xlu0 %1383 }
 0x37d   :  { %1725 = vmatpush.bf16.msrb.mxu1 %v3589_v22  ;;  %v2379_v22 = vor.u32 %v2548_v25, %v2376_v40  ;;  %v2427_v25 = vor.u32 %v2560_v36, %v2424_v41 }
 0x381   :  { %1726 = vmatpush.bf16.msrb.mxu1 %v3578_v6  ;;  %v2446_v6 = vld [vmem:[%s3924_s5 + $0x90] sm:$0xf]  ;;  %v3760_v44 = vpop.permute.xlu2 %1393  ;;  %v3762_v42 = vpop.permute.xlu1 %1403 }
 0x382   :  { %v2447_v16 = vor.u32 %v2567_v51, %v2446_v6  ;;  %v3767_v47 = vpop.permute.xlu0 %1398  ;;  %v2494_v51 = vld [vmem:[%s3924_s5 + $0xf0] sm:$0xf] }
 0x385   :  { %1727 = vmatpush.bf16.msrb.mxu1 %v3564_v38  ;;  %v2387_v38 = vor.u32 %v2550_v43, %v2384_v30  ;;  %v2579_v43 = vld [vmem:[%s3924_s5 + $0xf4] sm:$0xf0]  ;;  %v2562_v30 = vld [vmem:[%s3924_s5 + $0x74] sm:$0xf] }
 0x386   :  { %v2495_v7 = vor.u32 %v2579_v43, %v2494_v51 }
 0x388   :  { %1679 = vmatmul.bf16.gmra.mxu3 %v2439_v49  ;;  %1728 = vmatmul.bf16.vlgmr.msrb.gmra.mxu1 %v2379_v22 }
 0x389   :  { %v3780_v40 = vpop.permute.xlu2 %1408  ;;  %v3782_v49 = vpop.permute.xlu1 %1418 }
 0x38a   :  { %v3784_v22 = vpop.permute.xlu0 %1413 }
 0x38b   :  { %v3702_v54 = vpop.f32.mrf.mxu3 }
 0x391   :  { %v3802_v55 = vpop.permute.xlu1 %1433 }
 0x392   :  { %v3804_v9 = vpop.permute.xlu0 %1428 }
 0x393   :  { %v3710_v19 = vpop.f32.mrf.mxu3 }
 0x398   :  { %1684 = vmatmul.bf16.gmra.mxu3 %v2447_v16  ;;  %1733 = vmatmul.bf16.gmra.mxu1 %v2387_v38  ;;  %v2432_v16 = vld [vmem:[%s3924_s5 + $0x78] sm:$0xf0]  ;;  %v3800_v38 = vpop.permute.xlu2 %1423 }
 0x399   :  { %v2435_v58 = vor.u32 %v2562_v30, %v2432_v16  ;;  %v3810_v27 = vpop.permute.xlu1 %1448 }
 0x39a   :  { %v3812_v21 = vpop.permute.xlu0 %1443 }
 0x39b   :  { %v3730_v12 = vpop.f32.mrf.mxu3 }
 0x3a1   :  { %v3824_v39 = vpop.permute.xlu1 %1463 }
 0x3a3   :  { %v3738_v2 = vpop.f32.mrf.mxu3 }
 0x3a8   :  { %1689 = vmatmul.bf16.gmra.mxu3 %v2455_v0  ;;  %1738 = vmatmul.bf16.gmra.mxu1 %v2395_v11  ;;  %v3808_v11 = vpop.permute.xlu2 %1438 }
 0x3a9   :  { %v1913_v31 = vpop.permute.xlu1 %1912 }
 0x3ab   :  { %v3758_v29 = vpop.f32.mrf.mxu3 }
 0x3b0   :  { %v3822_v60 = vpop.permute.xlu2 %1453 }
 0x3b3   :  { %v3778_v32 = vpop.f32.mrf.mxu3 }
 0x3b8   :  { %1694 = vmatmul.bf16.gmra.mxu3 %v2463_v4  ;;  %1743 = vmatmul.bf16.gmra.mxu1 %v2403_v5  ;;  %v1641_v4 = vadd.f32 %v3702_v54, %v3682_v37  ;;  %v2443_v5 = vor.u32 %v2564_v8, %v2440_v61  ;;  %v2566_v37 = vld [vmem:[%s3924_s5 + $0x94] sm:$0xf]  ;;  %v2448_v54 = vld [vmem:[%s3924_s5 + $0x98] sm:$0xf0]  ;;  %v1648_v8 = vadd.f32 %v3738_v2, %v3686_v48 }
 0x3b9   :  { %v1651_v48 = vadd.f32 %v3758_v29, %v3704_v59  ;;  %v2570_v59 = vld [vmem:[%s3924_s5 + $0xb4] sm:$0xf]  ;;  %v2464_v29 = vld [vmem:[%s3924_s5 + $0xb8] sm:$0xf0] }
 0x3bb   :  { %v3786_v6 = vpop.f32.mrf.mxu3 }
 0x3c3   :  { %v3806_v0 = vpop.f32.mrf.mxu3 }
 0x3c8   :  { %1699 = vmatmul.bf16.gmra.mxu3 %v2471_v56  ;;  %1748 = vmatmul.bf16.gmra.mxu1 %v2411_v33  ;;  %v3826_v56 = vpop.permute.xlu0 %1458  ;;  %v1643_v33 = vadd.f32 %v3710_v19, %v3684_v50  ;;  %v1646_v50 = vadd.f32 %v3730_v12, %v3688_v52  ;;  %v2568_v12 = vld [vmem:[%s3924_s5 + $0xa4] sm:$0xf] }
 0x3cb   :  { %v3838_v41 = vpop.f32.mrf.mxu3 }
 0x3d0   :  { %v1908_v36 = vpop.permute.xlu0 %1907 }
 0x3d8   :  { %1704 = vmatmul.bf16.gmra.mxu3 %v2479_v62  ;;  %1753 = vmatmul.bf16.gmra.mxu1 %v2419_v23  ;;  %v3830_v23 = vpop.permute.xlu2 %1468 }
 0x3e8   :  { %1709 = vmatmul.bf16.gmra.mxu3 %v2487_v45  ;;  %1758 = vmatmul.bf16.gmra.mxu1 %v2427_v25  ;;  %v2451_v25 = vor.u32 %v2566_v37, %v2448_v54 }
 0x3f8   :  { %1714 = vmatmul.bf16.gmra.mxu3 %v2495_v7  ;;  %1763 = vmatmul.bf16.gmra.mxu1 %v2435_v58  ;;  %v1918_v58 = vpop.permute.xlu2 %1917 }
 0x405   :  { %v1729_v57 = vpop.f32.mrf.mxu1 }
 0x406   :  { %v1730_v35 = vadd.f32 %v1729_v57, %v1641_v4  ;;  %v3844_v4 = vpop.f32.mrf.mxu3 }
 0x408   :  { %1768 = vmatmul.bf16.gmra.mxu1 %v2443_v5  ;;  %v1809_v3 = vmul.f32 0.01, %v1730_v35 }
 0x40a   :  { %v1841_v13 = vmax.f32 %v1730_v35, %v1809_v3 }
 0x40c   :  { %v2065_v19 = vmul.f32 %v1908_v36, %v1841_v13  ;;  %v1928_v36 = vpop.permute.xlu1 %1927 }
 0x40d   :  { %v1731_v24 = vpop.f32.mrf.mxu1 }
 0x40e   :  { %v1732_v28 = vadd.f32 %v1731_v24, %v1643_v33  ;;  %v2456_v33 = vld [vmem:[%s3924_s5 + $0xa8] sm:$0xf0]  ;;  %v1923_v24 = vpop.permute.xlu0 %1922  ;;  %v1665_v54 = vpop.f32.mrf.mxu3 }
 0x410   :  { %v1810_v62 = vmul.f32 0.01, %v1732_v28 }
 0x412   :  { %v1842_v34 = vmax.f32 %v1732_v28, %v1810_v62  ;;  %v2459_v28 = vor.u32 %v2568_v12, %v2456_v33  ;;  %v1658_v33 = vadd.f32 %v3806_v0, %v3715_v15 }
 0x414   :  { %v2066_v45 = vmul.f32 %v1913_v31, %v1842_v34 }
 0x415   :  { %v1734_v51 = vpop.f32.mrf.mxu1 }
 0x416   :  { %v2097_v43 = vadd.f32 %v2066_v45, %v2065_v19  ;;  %v1735_v30 = vadd.f32 %v1734_v51, %v1646_v50  ;;  %v1653_v50 = vadd.f32 %v3778_v32, %v3708_v53  ;;  %v2467_v32 = vor.u32 %v2570_v59, %v2464_v29 }
 0x418   :  { %v1811_v16 = vmul.f32 0.01, %v1735_v30  ;;  %1773 = vmatmul.bf16.gmra.mxu1 %v2451_v25 }
 0x41a   :  { %v1843_v7 = vmax.f32 %v1735_v30, %v1811_v16  ;;  %v1667_v30 = vpop.f32.mrf.mxu3 }
 0x41c   :  { %v2067_v61 = vmul.f32 %v1918_v58, %v1843_v7  ;;  %v1933_v7 = vpop.permute.xlu2 %1932  ;;  %v1656_v58 = vadd.f32 %v3786_v6, %v3706_v10  ;;  %v2572_v10 = vld [vmem:[%s3924_s5 + $0xc4] sm:$0xf]  ;;  %v2472_v6 = vld [vmem:[%s3924_s5 + $0xc8] sm:$0xf0] }
 0x41d   :  { %v1736_v5 = vpop.f32.mrf.mxu1  ;;  %v2475_v15 = vor.u32 %v2572_v10, %v2472_v6 }
 0x41e   :  { %v2098_v57 = vadd.f32 %v2097_v43, %v2067_v61  ;;  %v1737_v35 = vadd.f32 %v1736_v5, %v1648_v8 }
 0x420   :  { %v1812_v52 = vmul.f32 0.01, %v1737_v35 }
 0x422   :  { %v1844_v3 = vmax.f32 %v1737_v35, %v1812_v52  ;;  %v1938_v52 = vpop.permute.xlu0 %1937  ;;  %v1670_v12 = vpop.f32.mrf.mxu3 }
 0x424   :  { %v2068_v2 = vmul.f32 %v1923_v24, %v1844_v3 }
 0x425   :  { %v1739_v13 = vpop.f32.mrf.mxu1 }
 0x426   :  { %v2099_v62 = vadd.f32 %v2098_v57, %v2068_v2  ;;  %v1740_v37 = vadd.f32 %v1739_v13, %v1651_v48 }
 0x428   :  { %v1813_v31 = vmul.f32 0.01, %v1740_v37  ;;  %1778 = vmatmul.bf16.gmra.mxu1 %v2459_v28 }
 0x42a   :  { %v1845_v34 = vmax.f32 %v1740_v37, %v1813_v31  ;;  %v1661_v37 = vadd.f32 %v3838_v41, %v3728_v17  ;;  %v1672_v0 = vpop.f32.mrf.mxu3  ;;  %v2574_v17 = vld [vmem:[%s3924_s5 + $0xd4] sm:$0xf]  ;;  %v2480_v41 = vld [vmem:[%s3924_s5 + $0xd8] sm:$0xf0] }
 0x42c   :  { %v2069_v19 = vmul.f32 %v1928_v36, %v1845_v34 }
 0x42d   :  { %v1741_v45 = vpop.f32.mrf.mxu1 }
 0x42e   :  { %v2100_v25 = vadd.f32 %v2099_v62, %v2069_v19  ;;  %v1742_v51 = vadd.f32 %v1741_v45, %v1653_v50  ;;  %v1943_v62 = vpop.permute.xlu1 %1942 }
 0x430   :  { %v1814_v43 = vmul.f32 0.01, %v1742_v51 }
 0x432   :  { %v1846_v16 = vmax.f32 %v1742_v51, %v1814_v43  ;;  %v1663_v51 = vadd.f32 %v3844_v4, %v3726_v18  ;;  %v2483_v18 = vor.u32 %v2574_v17, %v2480_v41 }
 0x434   :  { %v2070_v53 = vmul.f32 %v1933_v7, %v1846_v16  ;;  %v1675_v7 = vpop.f32.mrf.mxu3 }
 0x435   :  { %v1744_v8 = vpop.f32.mrf.mxu1 }
 0x436   :  { %v2101_v61 = vadd.f32 %v2100_v25, %v2070_v53  ;;  %v1745_v5 = vadd.f32 %v1744_v8, %v1656_v58  ;;  %v1948_v25 = vpop.permute.xlu2 %1947  ;;  %v1666_v8 = vadd.f32 %v1665_v54, %v3732_v20  ;;  %v2576_v20 = vld [vmem:[%s3924_s5 + $0xe4] sm:$0xf]  ;;  %v2488_v54 = vld [vmem:[%s3924_s5 + $0xe8] sm:$0xf0] }
 0x438   :  { %v1815_v57 = vmul.f32 0.01, %v1745_v5  ;;  %1783 = vmatmul.bf16.gmra.mxu1 %v2467_v32  ;;  %v1953_v32 = vpop.permute.xlu0 %1952 }
 0x43a   :  { %v1847_v35 = vmax.f32 %v1745_v5, %v1815_v57 }
 0x43c   :  { %v2071_v3 = vmul.f32 %v1938_v52, %v1847_v35  ;;  %v1677_v52 = vpop.f32.mrf.mxu3 }
 0x43d   :  { %v1746_v24 = vpop.f32.mrf.mxu1 }
 0x43e   :  { %v2102_v48 = vadd.f32 %v2101_v61, %v2071_v3  ;;  %v1747_v2 = vadd.f32 %v1746_v24, %v1658_v33  ;;  %v1958_v3 = vpop.permute.xlu1 %1957  ;;  %v1668_v24 = vadd.f32 %v1667_v30, %v3736_v14  ;;  %v2491_v14 = vor.u32 %v2576_v20, %v2488_v54 }
 0x440   :  { %v1816_v28 = vmul.f32 0.01, %v1747_v2 }
 0x442   :  { %v1848_v13 = vmax.f32 %v1747_v2, %v1816_v28 }
 0x444   :  { %v2072_v31 = vmul.f32 %v1943_v62, %v1848_v13  ;;  %v1963_v62 = vpop.permute.xlu2 %1962 }
 0x445   :  { %v1749_v34 = vpop.f32.mrf.mxu1 }
 0x446   :  { %v2103_v36 = vadd.f32 %v2102_v48, %v2072_v31  ;;  %v1750_v50 = vadd.f32 %v1749_v34, %v1661_v37  ;;  %v1680_v37 = vpop.f32.mrf.mxu3  ;;  %v1671_v31 = vadd.f32 %v1670_v12, %v3734_v26  ;;  %v2578_v26 = vld [vmem:[%s3924_s5 + $0xf4] sm:$0xf]  ;;  %v2496_v12 = vld [vmem:[%s3924_s5 + $0xf8] sm:$0xf0]  ;;  %v1973_v41 = vpop.permute.xlu1 %1972  ;;  %s2640_s5 = smov [#allocation3]  }
 0x447   :  { %s2153_s15 = sshll.u32 %s2640_s5, 4  ;;  %s2154_s15 = int_to_ptr.vmem [resolvable:$true] %s2153_s15 }
 0x448   :  { %v1817_v19 = vmul.f32 0.01, %v1750_v50  ;;  %1788 = vmatmul.bf16.gmra.mxu1 %v2475_v15 }
 0x44a   :  { %v1849_v45 = vmax.f32 %v1750_v50, %v1817_v19 }
 0x44c   :  { %v2073_v43 = vmul.f32 %v1948_v25, %v1849_v45  ;;  %v1968_v45 = vpop.permute.xlu0 %1967  ;;  %v1673_v25 = vadd.f32 %v1672_v0, %v3752_v46  ;;  %v2499_v46 = vor.u32 %v2578_v26, %v2496_v12 }
 0x44d   :  { %v1751_v59 = vpop.f32.mrf.mxu1 }
 0x44e   :  { %v2104_v29 = vadd.f32 %v2103_v36, %v2073_v43  ;;  %v1752_v16 = vadd.f32 %v1751_v59, %v1663_v51  ;;  %v1682_v43 = vpop.f32.mrf.mxu3 }
 0x450   :  { %v1818_v58 = vmul.f32 0.01, %v1752_v16 }
 0x452   :  { %v1850_v53 = vmax.f32 %v1752_v16, %v1818_v58 }
 0x454   :  { %v2074_v61 = vmul.f32 %v1953_v32, %v1850_v53  ;;  %v1676_v53 = vadd.f32 %v1675_v7, %v3756_v63  ;;  %v1983_v63 = vpop.permute.xlu0 %1982  ;;  %v1681_v7 = vadd.f32 %v1680_v37, %v3760_v44 }
 0x455   :  { %v1754_v4 = vpop.f32.mrf.mxu1 }
 0x456   :  { %v2105_v5 = vadd.f32 %v2104_v29, %v2074_v61  ;;  %v1755_v57 = vadd.f32 %v1754_v4, %v1666_v8 }
 0x458   :  { %v1819_v35 = vmul.f32 0.01, %v1755_v57  ;;  %1793 = vmatmul.bf16.gmra.mxu1 %v2483_v18  ;;  %v1685_v18 = vpop.f32.mrf.mxu3 }
 0x45a   :  { %v1851_v33 = vmax.f32 %v1755_v57, %v1819_v35  ;;  %v1978_v57 = vpop.permute.xlu2 %1977  ;;  %v1678_v35 = vadd.f32 %v1677_v52, %v3754_v1  ;;  %v1683_v1 = vadd.f32 %v1682_v43, %v3767_v47 }
 0x45c   :  { %v2075_v48 = vmul.f32 %v1958_v3, %v1851_v33  ;;  %v1998_v26 = vpop.permute.xlu0 %1997 }
 0x45d   :  { %v1756_v2 = vpop.f32.mrf.mxu1 }
 0x45e   :  { %v2106_v28 = vadd.f32 %v2105_v5, %v2075_v48  ;;  %v1757_v10 = vadd.f32 %v1756_v2, %v1668_v24 }
 0x460   :  { %v1820_v6 = vmul.f32 0.01, %v1757_v10 }
 0x462   :  { %v1852_v13 = vmax.f32 %v1757_v10, %v1820_v6 }
 0x464   :  { %v2076_v15 = vmul.f32 %v1963_v62, %v1852_v13 }
 0x465   :  { %v1759_v30 = vpop.f32.mrf.mxu1 }
 0x466   :  { %v2107_v34 = vadd.f32 %v2106_v28, %v2076_v15  ;;  %v1760_v36 = vadd.f32 %v1759_v30, %v1671_v31  ;;  %v1687_v28 = vpop.f32.mrf.mxu3  ;;  %v1988_v15 = vpop.permute.xlu1 %1987 }
 0x467   :  { %v1688_v12 = vadd.f32 %v1687_v28, %v3780_v40 }
 0x468   :  { %v1821_v50 = vmul.f32 0.01, %v1760_v36  ;;  %1798 = vmatmul.bf16.gmra.mxu1 %v2491_v14 }
 0x46a   :  { %v1853_v19 = vmax.f32 %v1760_v36, %v1821_v50 }
 0x46c   :  { %v2077_v51 = vmul.f32 %v1968_v45, %v1853_v19  ;;  %v1993_v45 = vpop.permute.xlu2 %1992 }
 0x46d   :  { %v1761_v59 = vpop.f32.mrf.mxu1 }
 0x46e   :  { %v2108_v29 = vadd.f32 %v2107_v34, %v2077_v51  ;;  %v1762_v16 = vadd.f32 %v1761_v59, %v1673_v25  ;;  %v1690_v14 = vpop.f32.mrf.mxu3  ;;  %v1686_v25 = vadd.f32 %v1685_v18, %v3762_v42 }
 0x46f   :  { %v1691_v42 = vadd.f32 %v1690_v14, %v3784_v22 }
 0x470   :  { %v1822_v58 = vmul.f32 0.01, %v1762_v16 }
 0x472   :  { %v1854_v17 = vmax.f32 %v1762_v16, %v1822_v58 }
 0x474   :  { %v2078_v32 = vmul.f32 %v1973_v41, %v1854_v17 }
 0x475   :  { %v1764_v0 = vpop.f32.mrf.mxu1 }
 0x476   :  { %v2109_v8 = vadd.f32 %v2108_v29, %v2078_v32  ;;  %v1765_v61 = vadd.f32 %v1764_v0, %v1676_v53  ;;  %v1692_v37 = vpop.f32.mrf.mxu3  ;;  %v2003_v0 = vpop.permute.xlu1 %2002 }
 0x478   :  { %v1823_v4 = vmul.f32 0.01, %v1765_v61  ;;  %1803 = vmatmul.bf16.gmra.mxu1 %v2499_v46 }
 0x47a   :  { %v1855_v5 = vmax.f32 %v1765_v61, %v1823_v4 }
 0x47c   :  { %v2079_v33 = vmul.f32 %v1978_v57, %v1855_v5 }
 0x47d   :  { %v1766_v3 = vpop.f32.mrf.mxu1 }
 0x47e   :  { %v2110_v24 = vadd.f32 %v2109_v8, %v2079_v33  ;;  %v1767_v48 = vadd.f32 %v1766_v3, %v1678_v35  ;;  %v1695_v53 = vpop.f32.mrf.mxu3  ;;  %v2008_v33 = vpop.permute.xlu2 %2007 }
 0x480   :  { %v1824_v2 = vmul.f32 0.01, %v1767_v48 }
 0x482   :  { %v1856_v10 = vmax.f32 %v1767_v48, %v1824_v2 }
 0x484   :  { %v2080_v6 = vmul.f32 %v1983_v63, %v1856_v10 }
 0x485   :  { %v1769_v20 = vpop.f32.mrf.mxu1 }
 0x486   :  { %v2111_v54 = vadd.f32 %v2110_v24, %v2080_v6  ;;  %v1770_v13 = vadd.f32 %v1769_v20, %v1681_v7  ;;  %v1697_v57 = vpop.f32.mrf.mxu3 }
 0x488   :  { %v1825_v62 = vmul.f32 0.01, %v1770_v13 }
 0x48a   :  { %v1857_v31 = vmax.f32 %v1770_v13, %v1825_v62  ;;  %v1693_v62 = vadd.f32 %v1692_v37, %v3782_v49 }
 0x48c   :  { %v2081_v52 = vmul.f32 %v1988_v15, %v1857_v31  ;;  %v2013_v31 = vpop.permute.xlu0 %2012  ;;  %v1696_v15 = vadd.f32 %v1695_v53, %v3800_v38 }
 0x48d   :  { %v1771_v30 = vpop.f32.mrf.mxu1 }
 0x48e   :  { %v2112_v34 = vadd.f32 %v2111_v54, %v2081_v52  ;;  %v1772_v36 = vadd.f32 %v1771_v30, %v1683_v1  ;;  %v1700_v48 = vpop.f32.mrf.mxu3  ;;  %v1698_v1 = vadd.f32 %v1697_v57, %v3804_v9  ;;  %v2018_v30 = vpop.permute.xlu1 %2017 }
 0x490   :  { %v1826_v50 = vmul.f32 0.01, %v1772_v36 }
 0x492   :  { %v1858_v19 = vmax.f32 %v1772_v36, %v1826_v50 }
 0x494   :  { %v2082_v44 = vmul.f32 %v1993_v45, %v1858_v19  ;;  %v1701_v45 = vadd.f32 %v1700_v48, %v3802_v55 }
 0x495   :  { %v1774_v51 = vpop.f32.mrf.mxu1 }
 0x496   :  { %v2113_v59 = vadd.f32 %v2112_v34, %v2082_v44  ;;  %v1775_v29 = vadd.f32 %v1774_v51, %v1686_v25  ;;  %v1702_v28 = vpop.f32.mrf.mxu3  ;;  %v2033_v53 = vpop.permute.xlu1 %2032 }
 0x497   :  { %v1703_v44 = vadd.f32 %v1702_v28, %v3808_v11 }
 0x498   :  { %v1827_v16 = vmul.f32 0.01, %v1775_v29 }
 0x49a   :  { %v1859_v58 = vmax.f32 %v1775_v29, %v1827_v16  ;;  %v2028_v16 = vpop.permute.xlu0 %2027 }
 0x49c   :  { %v2083_v47 = vmul.f32 %v1998_v26, %v1859_v58 }
 0x49d   :  { %v1776_v43 = vpop.f32.mrf.mxu1 }
 0x49e   :  { %v2114_v17 = vadd.f32 %v2113_v59, %v2083_v47  ;;  %v1777_v41 = vadd.f32 %v1776_v43, %v1688_v12  ;;  %v1705_v7 = vpop.f32.mrf.mxu3  ;;  %v2023_v59 = vpop.permute.xlu2 %2022 }
 0x49f   :  { %v1706_v38 = vadd.f32 %v1705_v7, %v3812_v21 }
 0x4a0   :  { %v1828_v32 = vmul.f32 0.01, %v1777_v41 }
 0x4a2   :  { %v1860_v46 = vmax.f32 %v1777_v41, %v1828_v32  ;;  %v2043_v48 = vpop.permute.xlu0 %2042 }
 0x4a4   :  { %v2084_v8 = vmul.f32 %v2003_v0, %v1860_v46 }
 0x4a5   :  { %v1779_v61 = vpop.f32.mrf.mxu1 }
 0x4a6   :  { %v2115_v18 = vadd.f32 %v2114_v17, %v2084_v8  ;;  %v1780_v4 = vadd.f32 %v1779_v61, %v1691_v42  ;;  %v1707_v20 = vpop.f32.mrf.mxu3  ;;  %v2038_v57 = vpop.permute.xlu2 %2037 }
 0x4a7   :  { %v1708_v58 = vadd.f32 %v1707_v20, %v3810_v27 }
 0x4a8   :  { %v1829_v5 = vmul.f32 0.01, %v1780_v4 }
 0x4aa   :  { %v1861_v35 = vmax.f32 %v1780_v4, %v1829_v5 }
 0x4ac   :  { %v2085_v3 = vmul.f32 %v2008_v33, %v1861_v35 }
 0x4ad   :  { %v1781_v40 = vpop.f32.mrf.mxu1 }
 0x4ae   :  { %v2116_v24 = vadd.f32 %v2115_v18, %v2085_v3  ;;  %v1710_v54 = vpop.f32.mrf.mxu3  ;;  %v1782_v14 = vadd.f32 %v1781_v40, %v1693_v62 }
 0x4af   :  { %v1711_v55 = vadd.f32 %v1710_v54, %v3822_v60  ;;  %v2048_v54 = vpop.permute.xlu1 %2047 }
 0x4b0   :  { %v1830_v36 = vmul.f32 0.01, %v1782_v14 }
 0x4b2   :  { %v1862_v49 = vmax.f32 %v1782_v14, %v1830_v36 }
 0x4b4   :  { %v2086_v47 = vmul.f32 %v2013_v31, %v1862_v49 }
 0x4b5   :  { %v1784_v2 = vpop.f32.mrf.mxu1 }
 0x4b6   :  { %v1785_v52 = vadd.f32 %v1784_v2, %v1696_v15  ;;  %v1712_v34 = vpop.f32.mrf.mxu3  ;;  %v2117_v61 = vadd.f32 %v2116_v24, %v2086_v47 }
 0x4b7   :  { %v1713_v0 = vadd.f32 %v1712_v34, %v3826_v56 }
 0x4b8   :  { %v1831_v25 = vmul.f32 0.01, %v1785_v52 }
 0x4ba   :  { %v1863_v9 = vmax.f32 %v1785_v52, %v1831_v25 }
 0x4bc   :  { %v2087_v46 = vmul.f32 %v2018_v30, %v1863_v9  ;;  %v2053_v30 = vpop.permute.xlu2 %2052 }
 0x4bd   :  { %v1786_v10 = vpop.f32.mrf.mxu1 }
 0x4be   :  { %v1787_v50 = vadd.f32 %v1786_v10, %v1698_v1  ;;  %v1715_v32 = vpop.f32.mrf.mxu3  ;;  %v2118_v35 = vadd.f32 %v2117_v61, %v2087_v46 }
 0x4bf   :  { %v1716_v33 = vadd.f32 %v1715_v32, %v3824_v39 }
 0x4c0   :  { %v1832_v37 = vmul.f32 0.01, %v1787_v50 }
 0x4c2   :  { %v1864_v43 = vmax.f32 %v1787_v50, %v1832_v37  ;;  %v2063_v37 = vpop.permute.xlu1 %2062 }
 0x4c4   :  { %v2088_v18 = vmul.f32 %v2023_v59, %v1864_v43 }
 0x4c5   :  { %v1789_v63 = vpop.f32.mrf.mxu1 }
 0x4c6   :  { %v1790_v51 = vadd.f32 %v1789_v63, %v1701_v45  ;;  %v2119_v2 = vadd.f32 %v2118_v35, %v2088_v18  ;;  %v2058_v45 = vpop.permute.xlu0 %2057 }
 0x4c8   :  { %v1833_v26 = vmul.f32 0.01, %v1790_v51 }
 0x4ca   :  { %v1865_v21 = vmax.f32 %v1790_v51, %v1833_v26 }
 0x4cc   :  { %v2089_v60 = vmul.f32 %v2028_v16, %v1865_v21 }
 0x4cd   :  { %v1791_v6 = vpop.f32.mrf.mxu1 }
 0x4ce   :  { %v1792_v29 = vadd.f32 %v1791_v6, %v1703_v44  ;;  %v2120_v6 = vadd.f32 %v2119_v2, %v2089_v60 }
 0x4d0   :  { %v1834_v41 = vmul.f32 0.01, %v1792_v29 }
 0x4d2   :  { %v1866_v27 = vmax.f32 %v1792_v29, %v1834_v41 }
 0x4d4   :  { %v2090_v10 = vmul.f32 %v2033_v53, %v1866_v27 }
 0x4d5   :  { %v1794_v22 = vpop.f32.mrf.mxu1 }
 0x4d6   :  { %v1795_v12 = vadd.f32 %v1794_v22, %v1706_v38  ;;  %v2121_v62 = vadd.f32 %v2120_v6, %v2090_v10 }
 0x4d8   :  { %v1835_v42 = vmul.f32 0.01, %v1795_v12 }
 0x4da   :  { %v1867_v3 = vmax.f32 %v1795_v12, %v1835_v42  ;;  %v2138_v12 = vpop.permute.xlu2 %2137 }
 0x4db   :  { %v2140_v43 = vperm.slane %v2138_v12, 0 }
 0x4dc   :  { %v2091_v24 = vmul.f32 %v2038_v57, %v1867_v3 }
 0x4dd   :  { %v1796_v13 = vpop.f32.mrf.mxu1 }
 0x4de   :  { %v1797_v11 = vadd.f32 %v1796_v13, %v1708_v58  ;;  %v1717_v13 = vpop.f32.mrf.mxu3  ;;  %v2122_v14 = vadd.f32 %v2121_v62, %v2091_v24 }
 0x4df   :  { %v1718_v39 = vadd.f32 %v1717_v13, %v3830_v23 }
 0x4e0   :  { %v1836_v4 = vmul.f32 0.01, %v1797_v11 }
 0x4e2   :  { %v1868_v56 = vmax.f32 %v1797_v11, %v1836_v4 }
 0x4e4   :  { %v2092_v31 = vmul.f32 %v2043_v48, %v1868_v56 }
 0x4e5   :  { %v1799_v19 = vpop.f32.mrf.mxu1 }
 0x4e6   :  { %v1800_v8 = vadd.f32 %v1799_v19, %v1711_v55  ;;  %v2123_v36 = vadd.f32 %v2122_v14, %v2092_v31 }
 0x4e8   :  { %v1837_v40 = vmul.f32 0.01, %v1800_v8 }
 0x4ea   :  { %v1869_v20 = vmax.f32 %v1800_v8, %v1837_v40 }
 0x4ec   :  { %v2093_v1 = vmul.f32 %v2048_v54, %v1869_v20 }
 0x4ed   :  { %v1801_v17 = vpop.f32.mrf.mxu1 }
 0x4ee   :  { %v1802_v5 = vadd.f32 %v1801_v17, %v1713_v0  ;;  %v2124_v25 = vadd.f32 %v2123_v36, %v2093_v1 }
 0x4f0   :  { %v1838_v63 = vmul.f32 0.01, %v1802_v5 }
 0x4f2   :  { %v1870_v15 = vmax.f32 %v1802_v5, %v1838_v63 }
 0x4f4   :  { %v2094_v50 = vmul.f32 %v2053_v30, %v1870_v15 }
 0x4f5   :  { %v1804_v28 = vpop.f32.mrf.mxu1 }
 0x4f6   :  { %v1805_v7 = vadd.f32 %v1804_v28, %v1716_v33  ;;  %v2125_v59 = vadd.f32 %v2124_v25, %v2094_v50 }
 0x4f8   :  { %v1839_v22 = vmul.f32 0.01, %v1805_v7 }
 0x4fa   :  { %v1871_v52 = vmax.f32 %v1805_v7, %v1839_v22 }
 0x4fc   :  { %v2095_v44 = vmul.f32 %v2058_v45, %v1871_v52 }
 0x4fd   :  { %v1806_v34 = vpop.f32.mrf.mxu1 }
 0x4fe   :  { %v1807_v19 = vadd.f32 %v1806_v34, %v1718_v39  ;;  %v2126_v38 = vadd.f32 %v2125_v59, %v2095_v44 }
 0x500   :  { %v1840_v51 = vmul.f32 0.01, %v1807_v19 }
 0x502   :  { %v1872_v49 = vmax.f32 %v1807_v19, %v1840_v51 }
 0x504   :  { %v2096_v29 = vmul.f32 %v2063_v37, %v1872_v49 }
 0x506   :  { %v2127_v16 = vadd.f32 %v2126_v38, %v2096_v29 }
 0x508   :  { %v2128_v9 = vrot.slane %v2127_v16, 4 }
 0x50a   :  { %v2129_v23 = vadd.f32 %v2128_v9, %v2127_v16 }
 0x50c   :  { %v2130_v58 = vrot.slane %v2129_v23, 2 }
 0x50e   :  { %v2131_v26 = vadd.f32 %v2130_v58, %v2129_v23 }
 0x510   :  { %v2132_v47 = vrot.slane %v2131_v26, 1 }
 0x512   :  { %v2133_v17 = vadd.f32 %v2132_v47, %v2131_v26 }
 0x514   :  { %v2141_v55 = vadd.f32 %v2140_v43, %v2133_v17 }
 0x516   :  { %v2142_v41 = vsub.f32 0.0, %v2141_v55 }
 0x518   :  { %v2143_v11 = vmul.f32 1.442695, %v2142_v41 }
 0x51a   :  { %2609 = vpow2.f32 %v2143_v11 }
 0x520   :  { %v2610_v53 = vpop.eup %2609 }
 0x521   :  { %v2145_v32 = vadd.f32 1.0, %v2610_v53 }
 0x523   :  { %2611 = vrcp.f32 %v2145_v32 }
 0x529   :  { %v2612_v46 = vpop.eup %2611 }
 0x52a   :  { %2147 = vst [vmem:[#allocation3] sm:$0x1] %v2612_v46 }
 0x52b   :  { %2158 = dma.vmem_to_hbm [thread:$0]  %s2154_s15, 16, %s2156_s17, [#allocation4]  }
 0x52c   :  { %2637 = dma.done.wait [#allocation4], 16  }
 0x52d   :  { %2638 = vsyncadd [#allocation4], 4294967280 }
 0x52e   :  { %2163 = vsyncpa [#allocation4], 1 }

</bundles_post_ra>
